<compile_context>
chip_gen: v7x
topology: tpu7x:2x2x1
jax: 0.10.0
libtpu: 0.0.40
codegen_flags: <defaults>
</compile_context>

<pallas_src>
import math
import numpy as np

import jax
import jax.numpy as jnp
from jax import lax
from jax.experimental import pallas as pl
from jax.experimental.pallas import tpu as pltpu


def epsilon_schedule(p, diameter, blur, scaling):
    # Same schedule as geomloss.sinkhorn_divergence.epsilon_schedule
    return (
        [diameter ** p]
        + [math.exp(e) for e in np.arange(p * math.log(diameter),
                                          p * math.log(blur),
                                          p * math.log(scaling))]
        + [blur ** p]
    )


def _mm_nt(a, b):
    # (M, D) x (N, D) -> (M, N): contraction over trailing dim (a @ b.T) on the MXU.
    return lax.dot_general(a, b, (((1,), (1,)), ((), ())),
                           preferred_element_type=jnp.float32)


def _softmin_lane(eps, Cs, h_row):
    # Cs = C * (1/eps) pre-scaled, shape (M, K); h_row broadcasts over rows.
    # Returns (M, 1):  -eps * log sum_k exp(h[k] - C[m, k] / eps)   (lane reduce)
    arg = h_row - Cs
    m = jnp.max(arg, axis=1, keepdims=True)
    lse = m + jnp.log(jnp.sum(jnp.exp(arg - m), axis=1, keepdims=True))
    return -eps * lse


def _softmin_sublane(eps, Cs, h_col):
    # Cs = C * (1/eps) pre-scaled, shape (K, M); h_col broadcasts over columns.
    # Returns (1, M):  -eps * log sum_k exp(h[k] - C[k, m] / eps)   (sublane reduce)
    arg = h_col - Cs
    m = jnp.max(arg, axis=0, keepdims=True)
    lse = m + jnp.log(jnp.sum(jnp.exp(arg - m), axis=0, keepdims=True))
    return -eps * lse


def _loss_kernel(eps_ref, x_ref, y_ref, out_ref):
    x = x_ref[0]  # (N, D) = (H, W)
    y = y_ref[0]
    N = x.shape[0]

    # Identity mask for cheap, guaranteed-lowering (N,1) <-> (1,N) orientation flips
    # (mul + reduce on the VPU/XLU; avoids transpose/reshape lowering corner cases
    # and keeps the single EUP exp stream as the only N^2-heavy work in the loop).
    row_ids = lax.broadcasted_iota(jnp.int32, (N, N), 0)
    col_ids = lax.broadcasted_iota(jnp.int32, (N, N), 1)
    eye = (row_ids == col_ids).astype(jnp.float32)

    def flip_c2r(v):   # (N, 1) -> (1, N)
        return jnp.sum(eye * v, axis=0, keepdims=True)

    def flip_r2c(r):   # (1, N) -> (N, 1)
        return jnp.sum(eye * r, axis=1, keepdims=True)

    # ---- count loss contribution: per-batch squared error of total counts ----
    sx = jnp.sum(x)
    sy = jnp.sum(y)
    cnt_err = (sx - sy) ** 2

    # ---- normalize densities to probability maps (as in the reference forward) ----
    xn = x * (1.0 / (sx + 1e-8))
    yn = y * (1.0 / (sy + 1e-8))

    # ---- cost matrices C(u, v) = |u - v|^2 / 2 (geomloss p=2); C_yx == C_xy^T is
    #      never materialized ----
    x_sq_c = 0.5 * jnp.sum(xn * xn, axis=1, keepdims=True)   # (N, 1)
    y_sq_c = 0.5 * jnp.sum(yn * yn, axis=1, keepdims=True)   # (N, 1)
    x_sq_r = flip_c2r(x_sq_c)                                 # (1, N)
    y_sq_r = flip_c2r(y_sq_c)                                 # (1, N)
    C_xy = x_sq_c + y_sq_r - _mm_nt(xn, yn)                   # (N, N)
    C_xx = x_sq_c + x_sq_r - _mm_nt(xn, xn)                   # symmetric
    C_yy = y_sq_c + y_sq_r - _mm_nt(yn, yn)                   # symmetric

    log_w = -float(np.log(N))   # uniform log-weights log(1/N) for both clouds
    n_eps = eps_ref.shape[0]

    # ---- geomloss sinkhorn_loop initialisation (damping == 1, debias == True) ----
    # Carried orientations: f_ba as (N,1) column, g_ab / f_aa / g_bb as (1,N) rows.
    eps0 = eps_ref[0]
    inv0 = 1.0 / eps0
    Cxy_s0 = C_xy * inv0
    f_ba_c = _softmin_lane(eps0, Cxy_s0, log_w)            # x side, (N, 1)
    g_ab_r = _softmin_sublane(eps0, Cxy_s0, log_w)         # y side, (1, N)
    f_aa_r = _softmin_sublane(eps0, C_xx * inv0, log_w)    # (1, N)
    g_bb_r = _softmin_sublane(eps0, C_yy * inv0, log_w)    # (1, N)

    def body(i, carry):
        f_ba_c, g_ab_r, f_aa_r, g_bb_r = carry
        eps = eps_ref[i]
        inv = 1.0 / eps
        # Hoisted scaled cost matrices; C_xy's copy feeds both directions.
        Cxy_s = C_xy * inv
        Cxx_s = C_xx * inv
        Cyy_s = C_yy * inv
        # Cross terms (the former C_yx softmin is the sublane softmin on C_xy).
        ft_ba_c = _softmin_lane(eps, Cxy_s, g_ab_r * inv + log_w)      # (N, 1)
        gt_ab_r = _softmin_sublane(eps, Cxy_s, f_ba_c * inv + log_w)   # (1, N)
        # Debias self terms (symmetric cost matrices): one softmin + one small flip
        # each, instead of two full softmins.
        ft_aa_r = _softmin_sublane(eps, Cxx_s, flip_r2c(f_aa_r) * inv + log_w)
        gt_bb_r = _softmin_sublane(eps, Cyy_s, flip_r2c(g_bb_r) * inv + log_w)
        return (0.5 * (f_ba_c + ft_ba_c),
                0.5 * (g_ab_r + gt_ab_r),
                0.5 * (f_aa_r + ft_aa_r),
                0.5 * (g_bb_r + gt_bb_r))

    f_ba_c, g_ab_r, f_aa_r, g_bb_r = lax.fori_loop(
        0, n_eps, body, (f_ba_c, g_ab_r, f_aa_r, g_bb_r))

    # ---- last extrapolation at the target blur (simultaneous, using old duals) ----
    eps_l = eps_ref[n_eps - 1]
    inv_l = 1.0 / eps_l
    Cxy_sl = C_xy * inv_l
    f_ba_fin = _softmin_lane(eps_l, Cxy_sl, g_ab_r * inv_l + log_w)          # (N, 1)
    g_ab_fin = _softmin_sublane(eps_l, Cxy_sl, f_ba_c * inv_l + log_w)       # (1, N)
    f_aa_fin = _softmin_lane(eps_l, C_xx * inv_l, f_aa_r * inv_l + log_w)    # (N, 1)
    g_bb_fin = _softmin_lane(eps_l, C_yy * inv_l, g_bb_r * inv_l + log_w)    # (N, 1)

    # ---- debiased Sinkhorn divergence:  <a, f_ba - f_aa> + <b, g_ab - g_bb> ----
    w = 1.0 / N
    sink = w * (jnp.sum(f_ba_fin) - jnp.sum(f_aa_fin)
                + jnp.sum(g_ab_fin) - jnp.sum(g_bb_fin))

    # Single lane-dense writeback: count error in sublane 0, sinkhorn in sublane 1.
    rid = lax.broadcasted_iota(jnp.int32, (1, 8, 128), 1)
    out_ref[...] = jnp.where(rid == 0, cnt_err, jnp.where(rid == 1, sink, 0.0))


def crowd_counting_loss(pred_map, gt_map, *, alpha=0.1,
                        diameter=224.0, blur=0.05, scaling=0.8, p=2):
    # `alpha` is kept for parity with the PyTorch __init__ but (as in the
    # reference forward) it is unused.
    B, C, H, W = pred_map.shape
    assert C == 1, "CrowdCountingLoss expects single-channel density maps (N, 1, H, W)"
    x = pred_map.astype(jnp.float32).reshape(B, H, W)   # .squeeze(1)
    y = gt_map.astype(jnp.float32).reshape(B, H, W)

    eps_arr = jnp.asarray(epsilon_schedule(p, diameter, blur, scaling),
                          dtype=jnp.float32)

    # Rough per-grid-step VMEM estimate (3 cost matrices + eye resident, scaled
    # copies / softmin temporaries transient, double-buffered inputs, output tile).
    n2 = H * H
    vmem_need = 4 * (10 * n2 + 6 * H * W + 2 * 8 * 128)
    vmem_limit = int(min(max(2 * vmem_need, 32 * 1024 * 1024), 64 * 1024 * 1024))

    grid_spec = pltpu.PrefetchScalarGridSpec(
        num_scalar_prefetch=1,            # eps schedule lives in SMEM
        grid=(B,),
        in_specs=[
            pl.BlockSpec((1, H, W), lambda b, eps: (b, 0, 0)),
            pl.BlockSpec((1, H, W), lambda b, eps: (b, 0, 0)),
        ],
        out_specs=pl.BlockSpec((1, 8, 128), lambda b, eps: (b, 0, 0)),
    )

    out = pl.pallas_call(
        _loss_kernel,
        out_shape=jax.ShapeDtypeStruct((B, 8, 128), jnp.float32),
        grid_spec=grid_spec,
        compiler_params=pltpu.CompilerParams(
            dimension_semantics=("parallel",),   # B-axis shards across v7x's 2 TCs
            vmem_limit_bytes=vmem_limit),
    )(eps_arr, x, y)

    count_loss = jnp.mean(out[:, 0, 0])      # F.mse_loss over the (B,) count vectors
    sinkhorn_loss = jnp.mean(out[:, 1, 0])   # torch.mean(self.sinkhorn(...))
    return count_loss + sinkhorn_loss


if __name__ == "__main__":
    key = jax.random.PRNGKey(0)
    k1, k2 = jax.random.split(key)
    B, C, H, W = 2, 1, 16, 16
    pred_map = jax.random.uniform(k1, (B, C, H, W), dtype=jnp.float32)
    gt_map = jax.random.uniform(k2, (B, C, H, W), dtype=jnp.float32)

    loss = crowd_counting_loss(pred_map, gt_map)
    jax.block_until_ready(loss)
    print("KERNEL_OK")
</pallas_src>

<mosaic_0001>
module attributes {stable_mosaic.version = 11 : i64} {
  func.func @_loss_kernel(%arg0: i32, %arg1: memref<40xf32, #tpu.memory_space<smem>>, %arg2: memref<1x16x16xf32, #tpu.memory_space<vmem>>, %arg3: memref<1x16x16xf32, #tpu.memory_space<vmem>>, %arg4: memref<1x8x128xf32, #tpu.memory_space<vmem>>) attributes {dimension_semantics = [#tpu.dimension_semantics<parallel>], iteration_bounds = array<i64: 2>, scalar_prefetch = 1 : i64, scratch_operands = 0 : i64, tpu.core_type = #tpu.core_type<tc>, window_params = [{transform_indices = @transform_0, window_bounds = array<i64: 1, 16, 16>}, {transform_indices = @transform_1, window_bounds = array<i64: 1, 16, 16>}, {transform_indices = @transform_2, window_bounds = array<i64: 1, 8, 128>}]} {
    %c0 = arith.constant 0 : index
    %c0_0 = arith.constant 0 : index
    %c0_1 = arith.constant 0 : index
    %0 = vector.load %arg2[%c0, %c0_0, %c0_1] : memref<1x16x16xf32, #tpu.memory_space<vmem>>, vector<1x16x16xf32>
    %1 = vector.shape_cast %0 : vector<1x16x16xf32> to vector<16x16xf32>
    %c0_2 = arith.constant 0 : index
    %c0_3 = arith.constant 0 : index
    %c0_4 = arith.constant 0 : index
    %2 = vector.load %arg3[%c0_2, %c0_3, %c0_4] : memref<1x16x16xf32, #tpu.memory_space<vmem>>, vector<1x16x16xf32>
    %3 = vector.shape_cast %2 : vector<1x16x16xf32> to vector<16x16xf32>
    %4 = tpu.iota {dimensions = array<i32: 0>} : vector<16x16xi32>
    %5 = tpu.iota {dimensions = array<i32: 1>} : vector<16x16xi32>
    %6 = arith.cmpi eq, %4, %5 : vector<16x16xi32>
    %7 = arith.extui %6 : vector<16x16xi1> to vector<16x16xi32>
    %8 = arith.sitofp %7 : vector<16x16xi32> to vector<16x16xf32>
    %9 = vector.shape_cast %1 : vector<16x16xf32> to vector<1x16x16xf32>
    %cst = arith.constant dense<0.000000e+00> : vector<1xf32>
    %10 = vector.multi_reduction <add>, %9, %cst [1, 2] : vector<1x16x16xf32> to vector<1xf32>
    %11 = vector.shape_cast %10 : vector<1xf32> to vector<1x1x1xf32>
    %12 = vector.extract %11[0, 0, 0] : f32 from vector<1x1x1xf32>
    %13 = vector.shape_cast %3 : vector<16x16xf32> to vector<1x16x16xf32>
    %cst_5 = arith.constant dense<0.000000e+00> : vector<1xf32>
    %14 = vector.multi_reduction <add>, %13, %cst_5 [1, 2] : vector<1x16x16xf32> to vector<1xf32>
    %15 = vector.shape_cast %14 : vector<1xf32> to vector<1x1x1xf32>
    %16 = vector.extract %15[0, 0, 0] : f32 from vector<1x1x1xf32>
    %17 = arith.subf %12, %16 : f32
    %18 = arith.mulf %17, %17 : f32
    %cst_6 = arith.constant 9.99999993E-9 : f32
    %19 = arith.addf %12, %cst_6 : f32
    %cst_7 = arith.constant 1.000000e+00 : f32
    %20 = arith.divf %cst_7, %19 : f32
    %21 = vector.broadcast %20 : f32 to vector<16x16xf32>
    %22 = arith.mulf %1, %21 : vector<16x16xf32>
    %cst_8 = arith.constant 9.99999993E-9 : f32
    %23 = arith.addf %16, %cst_8 : f32
    %cst_9 = arith.constant 1.000000e+00 : f32
    %24 = arith.divf %cst_9, %23 : f32
    %25 = vector.broadcast %24 : f32 to vector<16x16xf32>
    %26 = arith.mulf %3, %25 : vector<16x16xf32>
    %27 = arith.mulf %22, %22 : vector<16x16xf32>
    %cst_10 = arith.constant dense<0.000000e+00> : vector<16xf32>
    %28 = vector.multi_reduction <add>, %27, %cst_10 [1] : vector<16x16xf32> to vector<16xf32>
    %29 = vector.shape_cast %28 : vector<16xf32> to vector<16x1xf32>
    %cst_11 = arith.constant 5.000000e-01 : f32
    %30 = vector.broadcast %cst_11 : f32 to vector<16x1xf32>
    %31 = arith.mulf %30, %29 : vector<16x1xf32>
    %32 = arith.mulf %26, %26 : vector<16x16xf32>
    %cst_12 = arith.constant dense<0.000000e+00> : vector<16xf32>
    %33 = vector.multi_reduction <add>, %32, %cst_12 [1] : vector<16x16xf32> to vector<16xf32>
    %34 = vector.shape_cast %33 : vector<16xf32> to vector<16x1xf32>
    %cst_13 = arith.constant 5.000000e-01 : f32
    %35 = vector.broadcast %cst_13 : f32 to vector<16x1xf32>
    %36 = arith.mulf %35, %34 : vector<16x1xf32>
    %37 = vector.broadcast %31 : vector<16x1xf32> to vector<16x16xf32>
    %38 = arith.mulf %8, %37 : vector<16x16xf32>
    %cst_14 = arith.constant dense<0.000000e+00> : vector<16xf32>
    %39 = vector.multi_reduction <add>, %38, %cst_14 [0] : vector<16x16xf32> to vector<16xf32>
    %40 = vector.shape_cast %39 : vector<16xf32> to vector<1x16xf32>
    %41 = vector.broadcast %36 : vector<16x1xf32> to vector<16x16xf32>
    %42 = arith.mulf %8, %41 : vector<16x16xf32>
    %cst_15 = arith.constant dense<0.000000e+00> : vector<16xf32>
    %43 = vector.multi_reduction <add>, %42, %cst_15 [0] : vector<16x16xf32> to vector<16xf32>
    %44 = vector.shape_cast %43 : vector<16xf32> to vector<1x16xf32>
    %45 = vector.broadcast %31 : vector<16x1xf32> to vector<16x16xf32>
    %46 = vector.broadcast %44 : vector<1x16xf32> to vector<16x16xf32>
    %47 = arith.addf %45, %46 : vector<16x16xf32>
    %cst_16 = arith.constant dense<0.000000e+00> : vector<16x16xf32>
    %48 = tpu.matmul %22, %26, %cst_16 {dimension_numbers = #tpu.dot_dimension_numbers<[1], [1], [0], [0], [0, 0, 1, 0], [], []>} : vector<16x16xf32>, vector<16x16xf32>, vector<16x16xf32> -> vector<16x16xf32>
    %49 = arith.subf %47, %48 : vector<16x16xf32>
    %50 = vector.broadcast %31 : vector<16x1xf32> to vector<16x16xf32>
    %51 = vector.broadcast %40 : vector<1x16xf32> to vector<16x16xf32>
    %52 = arith.addf %50, %51 : vector<16x16xf32>
    %cst_17 = arith.constant dense<0.000000e+00> : vector<16x16xf32>
    %53 = tpu.matmul %22, %22, %cst_17 {dimension_numbers = #tpu.dot_dimension_numbers<[1], [1], [0], [0], [0, 0, 1, 0], [], []>} : vector<16x16xf32>, vector<16x16xf32>, vector<16x16xf32> -> vector<16x16xf32>
    %54 = arith.subf %52, %53 : vector<16x16xf32>
    %55 = vector.broadcast %36 : vector<16x1xf32> to vector<16x16xf32>
    %56 = vector.broadcast %44 : vector<1x16xf32> to vector<16x16xf32>
    %57 = arith.addf %55, %56 : vector<16x16xf32>
    %cst_18 = arith.constant dense<0.000000e+00> : vector<16x16xf32>
    %58 = tpu.matmul %26, %26, %cst_18 {dimension_numbers = #tpu.dot_dimension_numbers<[1], [1], [0], [0], [0, 0, 1, 0], [], []>} : vector<16x16xf32>, vector<16x16xf32>, vector<16x16xf32> -> vector<16x16xf32>
    %59 = arith.subf %57, %58 : vector<16x16xf32>
    %c0_19 = arith.constant 0 : index
    %60 = memref.load %arg1[%c0_19] : memref<40xf32, #tpu.memory_space<smem>>
    %cst_20 = arith.constant 1.000000e+00 : f32
    %61 = arith.divf %cst_20, %60 : f32
    %62 = vector.broadcast %61 : f32 to vector<16x16xf32>
    %63 = arith.mulf %49, %62 : vector<16x16xf32>
    %cst_21 = arith.constant -2.77258873 : f32
    %64 = vector.broadcast %cst_21 : f32 to vector<16x16xf32>
    %65 = arith.subf %64, %63 : vector<16x16xf32>
    %cst_22 = arith.constant dense<0xFF800000> : vector<16xf32>
    %66 = vector.multi_reduction <maximumf>, %65, %cst_22 [1] : vector<16x16xf32> to vector<16xf32>
    %67 = vector.shape_cast %66 : vector<16xf32> to vector<16x1xf32>
    %68 = vector.broadcast %67 : vector<16x1xf32> to vector<16x16xf32>
    %69 = arith.subf %65, %68 : vector<16x16xf32>
    %70 = math.exp %69 : vector<16x16xf32>
    %cst_23 = arith.constant dense<0.000000e+00> : vector<16xf32>
    %71 = vector.multi_reduction <add>, %70, %cst_23 [1] : vector<16x16xf32> to vector<16xf32>
    %72 = vector.shape_cast %71 : vector<16xf32> to vector<16x1xf32>
    %73 = math.log %72 : vector<16x1xf32>
    %74 = arith.addf %67, %73 : vector<16x1xf32>
    %cst_24 = arith.constant 0.000000e+00 : f32
    %75 = arith.subf %cst_24, %60 : f32
    %76 = vector.broadcast %75 : f32 to vector<16x1xf32>
    %77 = arith.mulf %76, %74 : vector<16x1xf32>
    %cst_25 = arith.constant -2.77258873 : f32
    %78 = vector.broadcast %cst_25 : f32 to vector<16x16xf32>
    %79 = arith.subf %78, %63 : vector<16x16xf32>
    %cst_26 = arith.constant dense<0xFF800000> : vector<16xf32>
    %80 = vector.multi_reduction <maximumf>, %79, %cst_26 [0] : vector<16x16xf32> to vector<16xf32>
    %81 = vector.shape_cast %80 : vector<16xf32> to vector<1x16xf32>
    %82 = vector.broadcast %81 : vector<1x16xf32> to vector<16x16xf32>
    %83 = arith.subf %79, %82 : vector<16x16xf32>
    %84 = math.exp %83 : vector<16x16xf32>
    %cst_27 = arith.constant dense<0.000000e+00> : vector<16xf32>
    %85 = vector.multi_reduction <add>, %84, %cst_27 [0] : vector<16x16xf32> to vector<16xf32>
    %86 = vector.shape_cast %85 : vector<16xf32> to vector<1x16xf32>
    %87 = math.log %86 : vector<1x16xf32>
    %88 = arith.addf %81, %87 : vector<1x16xf32>
    %cst_28 = arith.constant 0.000000e+00 : f32
    %89 = arith.subf %cst_28, %60 : f32
    %90 = vector.broadcast %89 : f32 to vector<1x16xf32>
    %91 = arith.mulf %90, %88 : vector<1x16xf32>
    %92 = vector.broadcast %61 : f32 to vector<16x16xf32>
    %93 = arith.mulf %54, %92 : vector<16x16xf32>
    %cst_29 = arith.constant -2.77258873 : f32
    %94 = vector.broadcast %cst_29 : f32 to vector<16x16xf32>
    %95 = arith.subf %94, %93 : vector<16x16xf32>
    %cst_30 = arith.constant dense<0xFF800000> : vector<16xf32>
    %96 = vector.multi_reduction <maximumf>, %95, %cst_30 [0] : vector<16x16xf32> to vector<16xf32>
    %97 = vector.shape_cast %96 : vector<16xf32> to vector<1x16xf32>
    %98 = vector.broadcast %97 : vector<1x16xf32> to vector<16x16xf32>
    %99 = arith.subf %95, %98 : vector<16x16xf32>
    %100 = math.exp %99 : vector<16x16xf32>
    %cst_31 = arith.constant dense<0.000000e+00> : vector<16xf32>
    %101 = vector.multi_reduction <add>, %100, %cst_31 [0] : vector<16x16xf32> to vector<16xf32>
    %102 = vector.shape_cast %101 : vector<16xf32> to vector<1x16xf32>
    %103 = math.log %102 : vector<1x16xf32>
    %104 = arith.addf %97, %103 : vector<1x16xf32>
    %cst_32 = arith.constant 0.000000e+00 : f32
    %105 = arith.subf %cst_32, %60 : f32
    %106 = vector.broadcast %105 : f32 to vector<1x16xf32>
    %107 = arith.mulf %106, %104 : vector<1x16xf32>
    %108 = vector.broadcast %61 : f32 to vector<16x16xf32>
    %109 = arith.mulf %59, %108 : vector<16x16xf32>
    %cst_33 = arith.constant -2.77258873 : f32
    %110 = vector.broadcast %cst_33 : f32 to vector<16x16xf32>
    %111 = arith.subf %110, %109 : vector<16x16xf32>
    %cst_34 = arith.constant dense<0xFF800000> : vector<16xf32>
    %112 = vector.multi_reduction <maximumf>, %111, %cst_34 [0] : vector<16x16xf32> to vector<16xf32>
    %113 = vector.shape_cast %112 : vector<16xf32> to vector<1x16xf32>
    %114 = vector.broadcast %113 : vector<1x16xf32> to vector<16x16xf32>
    %115 = arith.subf %111, %114 : vector<16x16xf32>
    %116 = math.exp %115 : vector<16x16xf32>
    %cst_35 = arith.constant dense<0.000000e+00> : vector<16xf32>
    %117 = vector.multi_reduction <add>, %116, %cst_35 [0] : vector<16x16xf32> to vector<16xf32>
    %118 = vector.shape_cast %117 : vector<16xf32> to vector<1x16xf32>
    %119 = math.log %118 : vector<1x16xf32>
    %120 = arith.addf %113, %119 : vector<1x16xf32>
    %cst_36 = arith.constant 0.000000e+00 : f32
    %121 = arith.subf %cst_36, %60 : f32
    %122 = vector.broadcast %121 : f32 to vector<1x16xf32>
    %123 = arith.mulf %122, %120 : vector<1x16xf32>
    %c0_i32 = arith.constant 0 : i32
    %c40_i32 = arith.constant 40 : i32
    %124 = arith.addi %c0_i32, %c40_i32 : i32
    %c1_i32 = arith.constant 1 : i32
    %125:4 = scf.for %arg5 = %c0_i32 to %124 step %c1_i32 iter_args(%arg6 = %77, %arg7 = %91, %arg8 = %107, %arg9 = %123) -> (vector<16x1xf32>, vector<1x16xf32>, vector<1x16xf32>, vector<1x16xf32>)  : i32 {
      %237 = arith.index_cast %arg5 : i32 to index
      %238 = memref.load %arg1[%237] : memref<40xf32, #tpu.memory_space<smem>>
      %cst_66 = arith.constant 1.000000e+00 : f32
      %239 = arith.divf %cst_66, %238 : f32
      %240 = vector.broadcast %239 : f32 to vector<16x16xf32>
      %241 = arith.mulf %49, %240 : vector<16x16xf32>
      %242 = vector.broadcast %239 : f32 to vector<16x16xf32>
      %243 = arith.mulf %54, %242 : vector<16x16xf32>
      %244 = vector.broadcast %239 : f32 to vector<16x16xf32>
      %245 = arith.mulf %59, %244 : vector<16x16xf32>
      %246 = vector.broadcast %239 : f32 to vector<1x16xf32>
      %247 = arith.mulf %arg7, %246 : vector<1x16xf32>
      %cst_67 = arith.constant -2.77258873 : f32
      %248 = vector.broadcast %cst_67 : f32 to vector<1x16xf32>
      %249 = arith.addf %247, %248 : vector<1x16xf32>
      %250 = vector.broadcast %249 : vector<1x16xf32> to vector<16x16xf32>
      %251 = arith.subf %250, %241 : vector<16x16xf32>
      %cst_68 = arith.constant dense<0xFF800000> : vector<16xf32>
      %252 = vector.multi_reduction <maximumf>, %251, %cst_68 [1] : vector<16x16xf32> to vector<16xf32>
      %253 = vector.shape_cast %252 : vector<16xf32> to vector<16x1xf32>
      %254 = vector.broadcast %253 : vector<16x1xf32> to vector<16x16xf32>
      %255 = arith.subf %251, %254 : vector<16x16xf32>
      %256 = math.exp %255 : vector<16x16xf32>
      %cst_69 = arith.constant dense<0.000000e+00> : vector<16xf32>
      %257 = vector.multi_reduction <add>, %256, %cst_69 [1] : vector<16x16xf32> to vector<16xf32>
      %258 = vector.shape_cast %257 : vector<16xf32> to vector<16x1xf32>
      %259 = math.log %258 : vector<16x1xf32>
      %260 = arith.addf %253, %259 : vector<16x1xf32>
      %cst_70 = arith.constant 0.000000e+00 : f32
      %261 = arith.subf %cst_70, %238 : f32
      %262 = vector.broadcast %261 : f32 to vector<16x1xf32>
      %263 = arith.mulf %262, %260 : vector<16x1xf32>
      %264 = vector.broadcast %239 : f32 to vector<16x1xf32>
      %265 = arith.mulf %arg6, %264 : vector<16x1xf32>
      %cst_71 = arith.constant -2.77258873 : f32
      %266 = vector.broadcast %cst_71 : f32 to vector<16x1xf32>
      %267 = arith.addf %265, %266 : vector<16x1xf32>
      %268 = vector.broadcast %267 : vector<16x1xf32> to vector<16x16xf32>
      %269 = arith.subf %268, %241 : vector<16x16xf32>
      %cst_72 = arith.constant dense<0xFF800000> : vector<16xf32>
      %270 = vector.multi_reduction <maximumf>, %269, %cst_72 [0] : vector<16x16xf32> to vector<16xf32>
      %271 = vector.shape_cast %270 : vector<16xf32> to vector<1x16xf32>
      %272 = vector.broadcast %271 : vector<1x16xf32> to vector<16x16xf32>
      %273 = arith.subf %269, %272 : vector<16x16xf32>
      %274 = math.exp %273 : vector<16x16xf32>
      %cst_73 = arith.constant dense<0.000000e+00> : vector<16xf32>
      %275 = vector.multi_reduction <add>, %274, %cst_73 [0] : vector<16x16xf32> to vector<16xf32>
      %276 = vector.shape_cast %275 : vector<16xf32> to vector<1x16xf32>
      %277 = math.log %276 : vector<1x16xf32>
      %278 = arith.addf %271, %277 : vector<1x16xf32>
      %cst_74 = arith.constant 0.000000e+00 : f32
      %279 = arith.subf %cst_74, %238 : f32
      %280 = vector.broadcast %279 : f32 to vector<1x16xf32>
      %281 = arith.mulf %280, %278 : vector<1x16xf32>
      %282 = vector.broadcast %arg8 : vector<1x16xf32> to vector<16x16xf32>
      %283 = arith.mulf %8, %282 : vector<16x16xf32>
      %cst_75 = arith.constant dense<0.000000e+00> : vector<16xf32>
      %284 = vector.multi_reduction <add>, %283, %cst_75 [1] : vector<16x16xf32> to vector<16xf32>
      %285 = vector.shape_cast %284 : vector<16xf32> to vector<16x1xf32>
      %286 = vector.broadcast %239 : f32 to vector<16x1xf32>
      %287 = arith.mulf %285, %286 : vector<16x1xf32>
      %cst_76 = arith.constant -2.77258873 : f32
      %288 = vector.broadcast %cst_76 : f32 to vector<16x1xf32>
      %289 = arith.addf %287, %288 : vector<16x1xf32>
      %290 = vector.broadcast %289 : vector<16x1xf32> to vector<16x16xf32>
      %291 = arith.subf %290, %243 : vector<16x16xf32>
      %cst_77 = arith.constant dense<0xFF800000> : vector<16xf32>
      %292 = vector.multi_reduction <maximumf>, %291, %cst_77 [0] : vector<16x16xf32> to vector<16xf32>
      %293 = vector.shape_cast %292 : vector<16xf32> to vector<1x16xf32>
      %294 = vector.broadcast %293 : vector<1x16xf32> to vector<16x16xf32>
      %295 = arith.subf %291, %294 : vector<16x16xf32>
      %296 = math.exp %295 : vector<16x16xf32>
      %cst_78 = arith.constant dense<0.000000e+00> : vector<16xf32>
      %297 = vector.multi_reduction <add>, %296, %cst_78 [0] : vector<16x16xf32> to vector<16xf32>
      %298 = vector.shape_cast %297 : vector<16xf32> to vector<1x16xf32>
      %299 = math.log %298 : vector<1x16xf32>
      %300 = arith.addf %293, %299 : vector<1x16xf32>
      %cst_79 = arith.constant 0.000000e+00 : f32
      %301 = arith.subf %cst_79, %238 : f32
      %302 = vector.broadcast %301 : f32 to vector<1x16xf32>
      %303 = arith.mulf %302, %300 : vector<1x16xf32>
      %304 = vector.broadcast %arg9 : vector<1x16xf32> to vector<16x16xf32>
      %305 = arith.mulf %8, %304 : vector<16x16xf32>
      %cst_80 = arith.constant dense<0.000000e+00> : vector<16xf32>
      %306 = vector.multi_reduction <add>, %305, %cst_80 [1] : vector<16x16xf32> to vector<16xf32>
      %307 = vector.shape_cast %306 : vector<16xf32> to vector<16x1xf32>
      %308 = vector.broadcast %239 : f32 to vector<16x1xf32>
      %309 = arith.mulf %307, %308 : vector<16x1xf32>
      %cst_81 = arith.constant -2.77258873 : f32
      %310 = vector.broadcast %cst_81 : f32 to vector<16x1xf32>
      %311 = arith.addf %309, %310 : vector<16x1xf32>
      %312 = vector.broadcast %311 : vector<16x1xf32> to vector<16x16xf32>
      %313 = arith.subf %312, %245 : vector<16x16xf32>
      %cst_82 = arith.constant dense<0xFF800000> : vector<16xf32>
      %314 = vector.multi_reduction <maximumf>, %313, %cst_82 [0] : vector<16x16xf32> to vector<16xf32>
      %315 = vector.shape_cast %314 : vector<16xf32> to vector<1x16xf32>
      %316 = vector.broadcast %315 : vector<1x16xf32> to vector<16x16xf32>
      %317 = arith.subf %313, %316 : vector<16x16xf32>
      %318 = math.exp %317 : vector<16x16xf32>
      %cst_83 = arith.constant dense<0.000000e+00> : vector<16xf32>
      %319 = vector.multi_reduction <add>, %318, %cst_83 [0] : vector<16x16xf32> to vector<16xf32>
      %320 = vector.shape_cast %319 : vector<16xf32> to vector<1x16xf32>
      %321 = math.log %320 : vector<1x16xf32>
      %322 = arith.addf %315, %321 : vector<1x16xf32>
      %cst_84 = arith.constant 0.000000e+00 : f32
      %323 = arith.subf %cst_84, %238 : f32
      %324 = vector.broadcast %323 : f32 to vector<1x16xf32>
      %325 = arith.mulf %324, %322 : vector<1x16xf32>
      %326 = arith.addf %arg6, %263 : vector<16x1xf32>
      %cst_85 = arith.constant 5.000000e-01 : f32
      %327 = vector.broadcast %cst_85 : f32 to vector<16x1xf32>
      %328 = arith.mulf %327, %326 : vector<16x1xf32>
      %329 = arith.addf %arg7, %281 : vector<1x16xf32>
      %cst_86 = arith.constant 5.000000e-01 : f32
      %330 = vector.broadcast %cst_86 : f32 to vector<1x16xf32>
      %331 = arith.mulf %330, %329 : vector<1x16xf32>
      %332 = arith.addf %arg8, %303 : vector<1x16xf32>
      %cst_87 = arith.constant 5.000000e-01 : f32
      %333 = vector.broadcast %cst_87 : f32 to vector<1x16xf32>
      %334 = arith.mulf %333, %332 : vector<1x16xf32>
      %335 = arith.addf %arg9, %325 : vector<1x16xf32>
      %cst_88 = arith.constant 5.000000e-01 : f32
      %336 = vector.broadcast %cst_88 : f32 to vector<1x16xf32>
      %337 = arith.mulf %336, %335 : vector<1x16xf32>
      scf.yield %328, %331, %334, %337 : vector<16x1xf32>, vector<1x16xf32>, vector<1x16xf32>, vector<1x16xf32>
    }
    %c40_i32_37 = arith.constant 40 : i32
    %c39 = arith.constant 39 : index
    %126 = memref.load %arg1[%c39] : memref<40xf32, #tpu.memory_space<smem>>
    %cst_38 = arith.constant 1.000000e+00 : f32
    %127 = arith.divf %cst_38, %126 : f32
    %128 = vector.broadcast %127 : f32 to vector<16x16xf32>
    %129 = arith.mulf %49, %128 : vector<16x16xf32>
    %130 = vector.broadcast %127 : f32 to vector<1x16xf32>
    %131 = arith.mulf %125#1, %130 : vector<1x16xf32>
    %cst_39 = arith.constant -2.77258873 : f32
    %132 = vector.broadcast %cst_39 : f32 to vector<1x16xf32>
    %133 = arith.addf %131, %132 : vector<1x16xf32>
    %134 = vector.broadcast %133 : vector<1x16xf32> to vector<16x16xf32>
    %135 = arith.subf %134, %129 : vector<16x16xf32>
    %cst_40 = arith.constant dense<0xFF800000> : vector<16xf32>
    %136 = vector.multi_reduction <maximumf>, %135, %cst_40 [1] : vector<16x16xf32> to vector<16xf32>
    %137 = vector.shape_cast %136 : vector<16xf32> to vector<16x1xf32>
    %138 = vector.broadcast %137 : vector<16x1xf32> to vector<16x16xf32>
    %139 = arith.subf %135, %138 : vector<16x16xf32>
    %140 = math.exp %139 : vector<16x16xf32>
    %cst_41 = arith.constant dense<0.000000e+00> : vector<16xf32>
    %141 = vector.multi_reduction <add>, %140, %cst_41 [1] : vector<16x16xf32> to vector<16xf32>
    %142 = vector.shape_cast %141 : vector<16xf32> to vector<16x1xf32>
    %143 = math.log %142 : vector<16x1xf32>
    %144 = arith.addf %137, %143 : vector<16x1xf32>
    %cst_42 = arith.constant 0.000000e+00 : f32
    %145 = arith.subf %cst_42, %126 : f32
    %146 = vector.broadcast %145 : f32 to vector<16x1xf32>
    %147 = arith.mulf %146, %144 : vector<16x1xf32>
    %148 = vector.broadcast %127 : f32 to vector<16x1xf32>
    %149 = arith.mulf %125#0, %148 : vector<16x1xf32>
    %cst_43 = arith.constant -2.77258873 : f32
    %150 = vector.broadcast %cst_43 : f32 to vector<16x1xf32>
    %151 = arith.addf %149, %150 : vector<16x1xf32>
    %152 = vector.broadcast %151 : vector<16x1xf32> to vector<16x16xf32>
    %153 = arith.subf %152, %129 : vector<16x16xf32>
    %cst_44 = arith.constant dense<0xFF800000> : vector<16xf32>
    %154 = vector.multi_reduction <maximumf>, %153, %cst_44 [0] : vector<16x16xf32> to vector<16xf32>
    %155 = vector.shape_cast %154 : vector<16xf32> to vector<1x16xf32>
    %156 = vector.broadcast %155 : vector<1x16xf32> to vector<16x16xf32>
    %157 = arith.subf %153, %156 : vector<16x16xf32>
    %158 = math.exp %157 : vector<16x16xf32>
    %cst_45 = arith.constant dense<0.000000e+00> : vector<16xf32>
    %159 = vector.multi_reduction <add>, %158, %cst_45 [0] : vector<16x16xf32> to vector<16xf32>
    %160 = vector.shape_cast %159 : vector<16xf32> to vector<1x16xf32>
    %161 = math.log %160 : vector<1x16xf32>
    %162 = arith.addf %155, %161 : vector<1x16xf32>
    %cst_46 = arith.constant 0.000000e+00 : f32
    %163 = arith.subf %cst_46, %126 : f32
    %164 = vector.broadcast %163 : f32 to vector<1x16xf32>
    %165 = arith.mulf %164, %162 : vector<1x16xf32>
    %166 = vector.broadcast %127 : f32 to vector<16x16xf32>
    %167 = arith.mulf %54, %166 : vector<16x16xf32>
    %168 = vector.broadcast %127 : f32 to vector<1x16xf32>
    %169 = arith.mulf %125#2, %168 : vector<1x16xf32>
    %cst_47 = arith.constant -2.77258873 : f32
    %170 = vector.broadcast %cst_47 : f32 to vector<1x16xf32>
    %171 = arith.addf %169, %170 : vector<1x16xf32>
    %172 = vector.broadcast %171 : vector<1x16xf32> to vector<16x16xf32>
    %173 = arith.subf %172, %167 : vector<16x16xf32>
    %cst_48 = arith.constant dense<0xFF800000> : vector<16xf32>
    %174 = vector.multi_reduction <maximumf>, %173, %cst_48 [1] : vector<16x16xf32> to vector<16xf32>
    %175 = vector.shape_cast %174 : vector<16xf32> to vector<16x1xf32>
    %176 = vector.broadcast %175 : vector<16x1xf32> to vector<16x16xf32>
    %177 = arith.subf %173, %176 : vector<16x16xf32>
    %178 = math.exp %177 : vector<16x16xf32>
    %cst_49 = arith.constant dense<0.000000e+00> : vector<16xf32>
    %179 = vector.multi_reduction <add>, %178, %cst_49 [1] : vector<16x16xf32> to vector<16xf32>
    %180 = vector.shape_cast %179 : vector<16xf32> to vector<16x1xf32>
    %181 = math.log %180 : vector<16x1xf32>
    %182 = arith.addf %175, %181 : vector<16x1xf32>
    %cst_50 = arith.constant 0.000000e+00 : f32
    %183 = arith.subf %cst_50, %126 : f32
    %184 = vector.broadcast %183 : f32 to vector<16x1xf32>
    %185 = arith.mulf %184, %182 : vector<16x1xf32>
    %186 = vector.broadcast %127 : f32 to vector<16x16xf32>
    %187 = arith.mulf %59, %186 : vector<16x16xf32>
    %188 = vector.broadcast %127 : f32 to vector<1x16xf32>
    %189 = arith.mulf %125#3, %188 : vector<1x16xf32>
    %cst_51 = arith.constant -2.77258873 : f32
    %190 = vector.broadcast %cst_51 : f32 to vector<1x16xf32>
    %191 = arith.addf %189, %190 : vector<1x16xf32>
    %192 = vector.broadcast %191 : vector<1x16xf32> to vector<16x16xf32>
    %193 = arith.subf %192, %187 : vector<16x16xf32>
    %cst_52 = arith.constant dense<0xFF800000> : vector<16xf32>
    %194 = vector.multi_reduction <maximumf>, %193, %cst_52 [1] : vector<16x16xf32> to vector<16xf32>
    %195 = vector.shape_cast %194 : vector<16xf32> to vector<16x1xf32>
    %196 = vector.broadcast %195 : vector<16x1xf32> to vector<16x16xf32>
    %197 = arith.subf %193, %196 : vector<16x16xf32>
    %198 = math.exp %197 : vector<16x16xf32>
    %cst_53 = arith.constant dense<0.000000e+00> : vector<16xf32>
    %199 = vector.multi_reduction <add>, %198, %cst_53 [1] : vector<16x16xf32> to vector<16xf32>
    %200 = vector.shape_cast %199 : vector<16xf32> to vector<16x1xf32>
    %201 = math.log %200 : vector<16x1xf32>
    %202 = arith.addf %195, %201 : vector<16x1xf32>
    %cst_54 = arith.constant 0.000000e+00 : f32
    %203 = arith.subf %cst_54, %126 : f32
    %204 = vector.broadcast %203 : f32 to vector<16x1xf32>
    %205 = arith.mulf %204, %202 : vector<16x1xf32>
    %206 = vector.shape_cast %147 : vector<16x1xf32> to vector<1x16x1xf32>
    %cst_55 = arith.constant dense<0.000000e+00> : vector<1xf32>
    %207 = vector.multi_reduction <add>, %206, %cst_55 [1, 2] : vector<1x16x1xf32> to vector<1xf32>
    %208 = vector.shape_cast %207 : vector<1xf32> to vector<1x1x1xf32>
    %209 = vector.extract %208[0, 0, 0] : f32 from vector<1x1x1xf32>
    %210 = vector.shape_cast %185 : vector<16x1xf32> to vector<1x16x1xf32>
    %cst_56 = arith.constant dense<0.000000e+00> : vector<1xf32>
    %211 = vector.multi_reduction <add>, %210, %cst_56 [1, 2] : vector<1x16x1xf32> to vector<1xf32>
    %212 = vector.shape_cast %211 : vector<1xf32> to vector<1x1x1xf32>
    %213 = vector.extract %212[0, 0, 0] : f32 from vector<1x1x1xf32>
    %214 = arith.subf %209, %213 : f32
    %215 = vector.shape_cast %165 : vector<1x16xf32> to vector<1x1x16xf32>
    %cst_57 = arith.constant dense<0.000000e+00> : vector<1xf32>
    %216 = vector.multi_reduction <add>, %215, %cst_57 [1, 2] : vector<1x1x16xf32> to vector<1xf32>
    %217 = vector.shape_cast %216 : vector<1xf32> to vector<1x1x1xf32>
    %218 = vector.extract %217[0, 0, 0] : f32 from vector<1x1x1xf32>
    %219 = arith.addf %214, %218 : f32
    %220 = vector.shape_cast %205 : vector<16x1xf32> to vector<1x16x1xf32>
    %cst_58 = arith.constant dense<0.000000e+00> : vector<1xf32>
    %221 = vector.multi_reduction <add>, %220, %cst_58 [1, 2] : vector<1x16x1xf32> to vector<1xf32>
    %222 = vector.shape_cast %221 : vector<1xf32> to vector<1x1x1xf32>
    %223 = vector.extract %222[0, 0, 0] : f32 from vector<1x1x1xf32>
    %224 = arith.subf %219, %223 : f32
    %cst_59 = arith.constant 6.250000e-02 : f32
    %225 = arith.mulf %cst_59, %224 : f32
    %226 = tpu.iota {dimensions = array<i32: 1>} : vector<1x8x128xi32>
    %c0_i32_60 = arith.constant 0 : i32
    %227 = vector.broadcast %c0_i32_60 : i32 to vector<1x8x128xi32>
    %228 = arith.cmpi eq, %226, %227 : vector<1x8x128xi32>
    %c1_i32_61 = arith.constant 1 : i32
    %229 = vector.broadcast %c1_i32_61 : i32 to vector<1x8x128xi32>
    %230 = arith.cmpi eq, %226, %229 : vector<1x8x128xi32>
    %cst_62 = arith.constant 0.000000e+00 : f32
    %231 = vector.broadcast %225 : f32 to vector<1x8x128xf32>
    %232 = vector.broadcast %cst_62 : f32 to vector<1x8x128xf32>
    %233 = arith.select %230, %231, %232 : vector<1x8x128xi1>, vector<1x8x128xf32>
    %234 = vector.broadcast %18 : f32 to vector<1x8x128xf32>
    %235 = arith.select %228, %234, %233 : vector<1x8x128xi1>, vector<1x8x128xf32>
    %c0_63 = arith.constant 0 : index
    %c0_64 = arith.constant 0 : index
    %c0_65 = arith.constant 0 : index
    %236 = vector.load %arg4[%c0_63, %c0_64, %c0_65] : memref<1x8x128xf32, #tpu.memory_space<vmem>>, vector<1x8x128xf32>
    tpu.vector_store %arg4[%c0_63, %c0_64, %c0_65], %235 {strides = array<i32>} : memref<1x8x128xf32, #tpu.memory_space<vmem>>, vector<1x8x128xf32>,
    return
  }
  func.func @transform_0(%arg0: i32, %arg1: memref<40xf32, #tpu.memory_space<smem>>) -> (i32, i32, i32) {
    %c0_i32 = arith.constant 0 : i32
    %c0_i32_0 = arith.constant 0 : i32
    %c0_i32_1 = arith.constant 0 : i32
    return %arg0, %c0_i32, %c0_i32_0 : i32, i32, i32
  }
  func.func @transform_1(%arg0: i32, %arg1: memref<40xf32, #tpu.memory_space<smem>>) -> (i32, i32, i32) {
    %c0_i32 = arith.constant 0 : i32
    %c0_i32_0 = arith.constant 0 : i32
    %c0_i32_1 = arith.constant 0 : i32
    return %arg0, %c0_i32, %c0_i32_0 : i32, i32, i32
  }
  func.func @transform_2(%arg0: i32, %arg1: memref<40xf32, #tpu.memory_space<smem>>) -> (i32, i32, i32) {
    %c0_i32 = arith.constant 0 : i32
    %c0_i32_0 = arith.constant 0 : i32
    %c0_i32_1 = arith.constant 0 : i32
    return %arg0, %c0_i32, %c0_i32_0 : i32, i32, i32
  }
}

</mosaic_0001>

<bundles_post_ra>
// kernel: tpu_custom_call.1
= control target key start
LH: loop header
LB: loop body
LE: loop exit
PB: predicated region body
PF: predicated region fallthrough
CT: control target
= control target key end

     0   :  { %s2256_s0 = inlined_call_operand.hbm [shape: f32[40], index: 0, kind: input, shape index: {}]   ;;  %s2257_s1 = inlined_call_operand.hbm [shape: f32[2,16,16], index: 1, kind: input, shape index: {}]   ;;  %s2258_s2 = inlined_call_operand.hbm [shape: f32[2,16,16], index: 2, kind: input, shape index: {}]   ;;  %s2259_s3 = inlined_call_operand.hbm [shape: f32[2,8,128], index: 3, kind: output, shape index: {}]  }
   0x1   :  { %s1488_s14 = scalar_lea.hbm %s2256_s0, 16 }
   0x2   :  { %p1489_p0 = scmp.ne.s32.totalorder %s2256_s0, %s1488_s14  ;;  %p1492_p1 = scmp.lt.u32.totalorder %s1488_s14, %s2256_s0 }
   0x4   :  { %p1494_p2 = pnand %p1492_p1, %p1489_p0 }
   0x6   :  { %1497 = shalt.err (!%p1494_p2)  }
   0x7   :  { %s1680_s19 = smov [#allocation3]  }
   0x8   :  { %9 = dma.hbm_to_smem %s2256_s0, 16, %s1680_s19, [#allocation2] }
   0x9   :  { %1626 = dma.done.wait [#allocation2], 16 }
   0xa   :  { %1627 = vsyncadd [#allocation2], 4294967280 }
   0xb   :  { %11 = sfence }
   0xc   :  { %12 = vsyncpa [#allocation5], 0 }
   0xd   :  { %14 = vsyncpa [#allocation5 + $0x1], 0 }
   0xe   :  { %15 = vsyncpa [#allocation8], 0 }
   0xf   :  { %17 = vsyncpa [#allocation8 + $0x1], 0 }
  0x10   :  { %18 = vsyncpa [#allocation6], 0 }
  0x11   :  { %20 = vsyncpa [#allocation6 + $0x1], 0  ;;  %s1719_s22 = smov 0   ;;  %s1721_s23 = smov 0  }
  0x12   :  { %s1723_s24 = smov 0   ;;  %s1725_s25 = smov 0  }
  0x13 LB: > { %s1740_s0 = sadd.s32 4294967295, %s1654_s25   ;;  %s1186_s26 = sadd.s32 4294967294, %s1654_s25   ;;  %s1654_s25 = sphi %s1725_s25, %s2284_s25   ;;  %s1650_s24 = sphi %s1723_s24, %s2283_s24   ;;  %s1646_s23 = sphi %s1721_s23, %s2282_s23   ;;  %s1642_s22 = sphi %s1719_s22, %s2281_s22  }
  0x14   : > { %s1744_s27 = sadd.s32 1, %s1654_s25   ;;  %s33_s28 = sadd.s32 1, %s1650_s24 }
  0x15   : > { %s30_s29 = ssub.s32 %s1654_s25, %s1744_s27  ;;  %p40_p3 = scmp.ne.s32.totalorder %s1650_s24, %s1646_s23 }
  0x16   : > { %p31_p4 = scmp.eq.s32.totalorder %s30_s29, 0  ;;  %p41_p5 = scmp.eq.s32.totalorder %s1654_s25, 0 }
  0x17   : > { %p46_p6 = scmp.ne.s32.totalorder %s1646_s23, %s1642_s22  ;;  %p47_p7 = scmp.eq.s32.totalorder %s1740_s0, 0 }
  0x18   : > { %s1756_s30 = scalar_select %p31_p4, %s1650_s24, %s33_s28  }
  0x19   : > { %p1758_p8 = por %p41_p5, %p40_p3  ;;  %p1762_p9 = por %p47_p7, %p46_p6 }
  0x1a   : > { %p96_p10 = scmp.eq.s32.totalorder %s1740_s0, 1  ;;  %p102_p11 = scmp.eq.s32.totalorder %s1186_s26, 1 }
  0x1b   : > { %s2263_s5 = scalar_select %p1762_p9, 1, 0 }
  0x1c   : > { %p1310_p13 = scmp.lt.s32.totalorder %s1654_s25, 2  ;;  %p1769_p0 = por %p96_p10, %p40_p3 }
  0x1d   : > { %p1773_p1 = por %p102_p11, %p46_p6  ;;  %s1778_s8 = sand.u32 1, %s1650_s24  }
  0x1e   : > { %s2264_s6 = scalar_select %p1769_p0, 1, 0 }
  0x1f   : > { %s2265_s7 = scalar_select %p1773_p1, 1, 0 }
  0x20   : > { %s1218_s9 = sshll.u32 %s1654_s25, 8  ;;  %s1189_s10 = sshll.u32 %s1778_s8, 4 }
  0x21   : > { %s1787_s13 = scalar_lea.hbm %s2257_s1, %s1218_s9  ;;  %s126_s14 = scalar_lea.vmem [#allocation4], %s1189_s10 }
  0x22   : > { %s133_s15 = sshll.u32 %s126_s14, 4  ;;  %p1793_p2 = pnand %p1310_p13, %p1758_p8  ;;  %s1797_s15 = int_to_ptr.vmem [resolvable:$true] %s133_s15 }
  0x23   : > { %s123_s17 = scalar_lea.sflag [#allocation5], %s1778_s8  ;;  %s1498_s18 = scalar_lea.hbm %s1787_s13, 256 }
  0x24   : > { %p1499_p3 = scmp.ne.s32.totalorder %s1787_s13, %s1498_s18  ;;  %p1500_p4 = pneg %p1793_p2 }
  0x25   : > { %s1503_s21 = scalar_lea.hbm %s2257_s1, 512  ;;  %p1504_p7 = scmp.lt.u32.totalorder %s1787_s13, %s2257_s1 }
  0x26   : > { %p1501_p5 = pnand %p1500_p4, %p1499_p3  ;;  %p1505_p8 = scmp.lt.u32.totalorder %s1503_s21, %s1498_s18 }
  0x27   : > { %p1507_p11 = scmp.lt.u32.totalorder %s1498_s18, %s1787_s13 }
  0x28   : > { %p1502_p6 = pneg %p1501_p5  ;;  %p1506_p10 = por %p1505_p8, %p1504_p7 }
  0x2a   : > { %p1508_p13 = por %p1507_p11, %p1506_p10 }
  0x2c   : > { %p1509_p12 = pnand %p1508_p13, %p1502_p6 }
  0x2e   : > { %1512 = shalt.err (!%p1509_p12)
}
  0x2f   : > { %s1513_s29 = scalar_lea.vmem %s1797_s15, 256  ;;  %s1681_s4 = smov [#allocation4]  }
  0x30   : > { %p1514_p3 = scmp.ne.s32.totalorder %s1797_s15, %s1513_s29  ;;  %s1518_s11 = sshll.u32 %s1681_s4, 4  ;;  %s1519_s11 = int_to_ptr.vmem [resolvable:$false] %s1518_s11 }
  0x31   : > { %s1520_s12 = scalar_lea.vmem %s1519_s11, 512  ;;  %p1521_p0 = scmp.lt.s32.totalorder %s1797_s15, %s1519_s11 }
  0x32   : > { %p1516_p5 = pnand %p1514_p3, %p1500_p4  ;;  %p1522_p7 = scmp.lt.s32.totalorder %s1520_s12, %s1513_s29 }
  0x34   : > { %p1517_p1 = pneg %p1516_p5  ;;  %p1523_p8 = por %p1522_p7, %p1521_p0 }
  0x36   : > { %p1524_p10 = pnand %p1523_p8, %p1517_p1 }
  0x38   : > { %1527 = shalt.err (!%p1524_p10)
}
  0x39   : > { %s1682_s14 = smov 128   ;;  %s1683_s18 = smov 8  }
  0x3a   : > { %1302 = dma.hbm_to_vmem [thread:$0]  (!%p1793_p2), %s1787_s13, 256, %s1797_s15, %s123_s17, %s1682_s14, %s1682_s14, %s1683_s18  }
  0x3b   : > { %p1195_p12 = scmp.ge.s32.totalorder %s1654_s25, 1  ;;  %p162_p0 = scmp.lt.s32.totalorder %s1654_s25, 3 }
  0x3c   : > { %s1841_s26 = scalar_lea.hbm %s2258_s2, %s1218_s9  ;;  %s147_s28 = scalar_lea.vmem [#allocation7], %s1189_s10 }
  0x3d   : > { %p1832_p1 = pnand %p1195_p12, %p162_p0  ;;  %s154_s29 = sshll.u32 %s147_s28, 4  ;;  %s1845_s29 = int_to_ptr.vmem [resolvable:$true] %s154_s29 }
  0x3e   : > { %s144_s13 = scalar_lea.sflag [#allocation8], %s1778_s8  ;;  %s1528_s15 = scalar_lea.hbm %s1841_s26, 256 }
  0x3f   : > { %p1529_p6 = scmp.ne.s32.totalorder %s1841_s26, %s1528_s15  ;;  %s1533_s9 = scalar_lea.hbm %s2258_s2, 512 }
  0x40   : > { %p1534_p3 = scmp.lt.u32.totalorder %s1841_s26, %s2258_s2  ;;  %p1535_p5 = scmp.lt.u32.totalorder %s1533_s9, %s1528_s15 }
  0x41   : > { %p1531_p11 = pnand %p1529_p6, %p1500_p4  ;;  %p1537_p8 = scmp.lt.u32.totalorder %s1528_s15, %s1841_s26 }
  0x42   : > { %p1536_p7 = por %p1535_p5, %p1534_p3 }
  0x43   : > { %p1532_p13 = pneg %p1531_p11 }
  0x44   : > { %p1538_p10 = por %p1537_p8, %p1536_p7 }
  0x46   : > { %p1539_p12 = pnand %p1538_p10, %p1532_p13 }
  0x48   : > { %1542 = shalt.err (!%p1539_p12)
}
  0x49   : > { %s1543_s10 = scalar_lea.vmem %s1845_s29, 256  ;;  %s1684_s20 = smov [#allocation7]  }
  0x4a   : > { %p1544_p0 = scmp.ne.s32.totalorder %s1845_s29, %s1543_s10  ;;  %s1548_s21 = sshll.u32 %s1684_s20, 4  ;;  %s1549_s21 = int_to_ptr.vmem [resolvable:$false] %s1548_s21 }
  0x4b   : > { %s1550_s28 = scalar_lea.vmem %s1549_s21, 512  ;;  %p1551_p9 = scmp.lt.s32.totalorder %s1845_s29, %s1549_s21 }
  0x4c   : > { %p1546_p6 = pnand %p1544_p0, %p1500_p4  ;;  %p1552_p3 = scmp.lt.s32.totalorder %s1550_s28, %s1543_s10 }
  0x4e   : > { %p1547_p11 = pneg %p1546_p6  ;;  %p1553_p5 = por %p1552_p3, %p1551_p9 }
  0x50   : > { %p1554_p7 = pnand %p1553_p5, %p1547_p11 }
  0x52   : > { %1557 = shalt.err (!%p1554_p7)
}
  0x53   : > { %1305 = dma.hbm_to_vmem [thread:$0]  (!%p1793_p2), %s1841_s26, 256, %s1845_s29, %s144_s13, %s1682_s14, %s1682_s14, %s1683_s18  }
  0x54   : > { %166 = sbr.rel (%p1832_p1) target bundleno = 1945 (0x799), region = 28  ;;  %s1879_s15 = sand.u32 (!%p1832_p1), 1, %s1646_s23  }
  0x55   : > { %s1196_s17 = sshll.u32 (!%p1832_p1), %s1879_s15, 4  ;;  %s169_s4 = scalar_lea.sflag (!%p1832_p1), [#allocation5], %s1879_s15 }
  0x56   : > { %s172_s16 = scalar_lea.vmem (!%p1832_p1), [#allocation4], %s1196_s17  ;;  %p2268_p9 = scmp.ne.s32.totalorder (!%p1832_p1), %s2263_s5, 0 }
  0x5b   : > { %1629 = dma.done.wait (%p2268_p9), %s169_s4, 256  }
  0x5c   : > { %1631 = vsyncadd (%p2268_p9), %s169_s4, 4294967040  ;;  %s178_s8 = scalar_lea.sflag [#allocation8], %s1879_s15  ;;  %s181_s14 = scalar_lea.vmem [#allocation7], %s1196_s17 }
  0x5d   : > { %1633 = dma.done.wait (%p2268_p9), %s178_s8, 256  }
  0x5e   : > { %1635 = vsyncadd (%p2268_p9), %s178_s8, 4294967040  ;;  %vm222_vm0 = vcmask 130048   ;;  %v207_v0 = vld [vmem:[%s172_s16] sm:$0xff]  ;;  %v208_v1 = vld [vmem:[%s172_s16 + $0x8] sm:$0xff]  ;;  %s1198_s5 = sshll.u32 %s1879_s15, 3  ;;  %s1929_s10 = sld [smem:[#allocation3]]  ;;  %v211_v47 = vlaneseq }
  0x5f   : > { %v209_v2 = vld [vmem:[%s181_s14] sm:$0xff]  ;;  %v223_v3 = vsel %vm222_vm0, %v207_v0, 0.0  ;;  %v224_v4 = vsel %vm222_vm0, %v208_v1, 0.0  ;;  %v210_v5 = vld [vmem:[%s181_s14 + $0x8] sm:$0xff]  ;;  %vm1903_vm1 = vmpackc.low %vm222_vm0, %vm222_vm0  ;;  %v1685_v51 = vmov 0.0   ;;  %s2003_s28 = scalar_lea.vmem [#allocation9], %s1198_s5 }
  0x60   : > { %v235_v6 = vsel %vm222_vm0, %v209_v2, 0.0  ;;  %v225_v7 = vadd.f32 %v224_v4, %v223_v3  ;;  %v236_v8 = vsel %vm222_vm0, %v210_v5, 0.0  ;;  %v1932_v48 = vshrl.u32 %v211_v47, 7  ;;  %s2015_s17 = smov 0  }
  0x61   : > { %v237_v9 = vadd.f32 %v236_v8, %v235_v6  ;;  %v215_v49 = vand.u32 127, %v211_v47 }
  0x62   : > { %226 = vadd.xlane.f32.xlu0 %v225_v7  ;;  %v213_v54 = vadd.s32 8, %v1932_v48 }
  0x63   : > { %vm216_vm2 = vcmp.eq.s32.totalorder %v1932_v48, %v215_v49 }
  0x64   : > { %v555_v45 = vstv %s1929_s10  ;;  %v1935_v52 = vsel %vm216_vm2, 1.0, %v1685_v51  ;;  %vm217_vm3 = vcmp.eq.s32.totalorder %v213_v54, %v215_v49  ;;  %s587_s21 = ssub.f32 0.0, %s1929_s10 }
  0x65   : > { %v1939_v58 = vsel %vm217_vm3, 1.0, %v1685_v51 }
  0x66   : > { %238 = vadd.xlane.f32.xlu0 %v237_v9 }
  0xef   : > { %v227_v10 = vpop.xlane.xlu0 %226 }
  0xf0   : > { %v228_v11 = vrot.slane %v227_v10, 4 }
  0xf2   : > { %v229_v12 = vadd.f32 %v228_v11, %v227_v10 }
  0xf3   : > { %v239_v13 = vpop.xlane.xlu0 %238 }
  0xf4   : > { %v230_v14 = vrot.slane %v229_v12, 2  ;;  %v240_v15 = vrot.slane %v239_v13, 4 }
  0xf6   : > { %v241_v16 = vadd.f32 %v240_v15, %v239_v13  ;;  %v231_v17 = vadd.f32 %v230_v14, %v229_v12 }
  0xf8   : > { %v242_v18 = vrot.slane %v241_v16, 2  ;;  %v232_v19 = vrot.slane %v231_v17, 1 }
  0xfa   : > { %v233_v20 = vadd.f32 %v232_v19, %v231_v17  ;;  %v243_v21 = vadd.f32 %v242_v18, %v241_v16 }
  0xfc   : > { %1271 = vpush %v233_v20  ;;  %v244_v22 = vrot.slane %v243_v21, 1 }
  0xfe   : > { %v245_v23 = vadd.f32 %v244_v22, %v243_v21 }
 0x100   : > { %1273 = vpush %v245_v23 }
 0x12d   : > { %s1272_s18 = spop %1271 }
 0x12e   : > { %s249_s19 = sadd.f32 1e-08, %s1272_s18 }
 0x130   : > { %v250_v24 = vstv %s249_s19 }
 0x131   : > { %1396 = vrcp.f32 %v250_v24  ;;  %s1274_s26 = spop %1273 }
 0x132   : > { %s1897_s29 = ssub.f32 %s1272_s18, %s1274_s26 }
 0x133   : > { %s256_s13 = sadd.f32 1e-08, %s1274_s26 }
 0x134   : > { %s248_s9 = smul.f32 %s1897_s29, %s1897_s29 }
 0x135   : > { %v257_v25 = vstv %s256_s13 }
 0x136   : > { %1398 = vrcp.f32 %v257_v25 }
 0x137   : > { %1400 = vrcp.f32 %v555_v45 }
 0x13b   : > { %v1397_v26 = vpop.eup %1396 }
 0x13c   : > { %1275 = vpush %v1397_v26 }
 0x140   : > { %v1399_v27 = vpop.eup %1398 }
 0x141   : > { %1277 = vpush %v1399_v27  ;;  %v1401_v46 = vpop.eup %1400 }
 0x142   : > { %1279 = vpush %v1401_v46 }
 0x16d   : > { %s1276_s11 = spop %1275 }
 0x16e   : > { %v253_v28 = vstv %s1276_s11 }
 0x16f   : > { %v254_v29 = vmul.f32 %v253_v28, %v207_v0  ;;  %v255_v30 = vmul.f32 %v253_v28, %v208_v1 }
 0x171   : > { %1236 = vmatprep.mubr.msk.f32.mxu0 %vm222_vm0, %v254_v29  ;;  %1243 = vmatprep.mubr.msk.f32.mxu1 %vm222_vm0, %v254_v29  ;;  %v1259_v32 = vpack.c.bf16 %v255_v30, %v254_v29  ;;  %v263_v33 = vmul.f32 %v254_v29, %v254_v29  ;;  %v264_v43 = vmul.f32 %v255_v30, %v255_v30 }
 0x172   : > { %s1278_s12 = spop %1277 }
 0x173   : > { %v260_v34 = vstv %s1278_s12  ;;  %1261 = vmatprep.subr.msk.bf16.mxu1 %vm1903_vm1, %v1259_v32  ;;  %v265_v35 = vsel %vm222_vm0, %v263_v33, 0.0  ;;  %v268_v44 = vsel %vm222_vm0, %v264_v43, 0.0  ;;  %s1280_s20 = spop %1279 }
 0x174   : > { %v261_v36 = vmul.f32 %v260_v34, %v209_v2  ;;  %v262_v37 = vmul.f32 %v260_v34, %v210_v5  ;;  %1264 = vmatpush3.bf16.xpose.msk.msra.mxu1 %vm1903_vm1, %v1259_v32  ;;  %266 = vadd.xlane.f32.xlu0 %v265_v35  ;;  %v558_v25 = vstv %s1280_s20 }
 0x176   : > { %v1253_v38 = vpack.c.bf16 %v262_v37, %v261_v36  ;;  %v273_v39 = vmul.f32 %v261_v36, %v261_v36  ;;  %v274_v41 = vmul.f32 %v262_v37, %v262_v37 }
 0x178   : > { %1255 = vmatprep.subr.msk.bf16.mxu0 %vm1903_vm1, %v1253_v38  ;;  %v275_v40 = vsel %vm222_vm0, %v273_v39, 0.0  ;;  %v278_v42 = vsel %vm222_vm0, %v274_v41, 0.0 }
 0x179   : > { %1258 = vmatpush3.bf16.xpose.msk.msra.mxu0 %vm1903_vm1, %v1253_v38  ;;  %276 = vadd.xlane.f32.xlu1 %v275_v40 }
 0x17a   : > { %1267 = vmatprep.subr.msk.bf16.mxu0 %vm1903_vm1, %v1253_v38 }
 0x17b   : > { %1244 = vmatmul.mubr.msk.f32.vlgmr.msra.gmra.mrb[0].mxu1 %vm222_vm0, %v255_v30 }
 0x17d   : > { %279 = vadd.xlane.f32.xlu1 %v278_v42 }
 0x180   : > { %1237 = vmatmul.mubr.msk.f32.vlgmr.msra.gmra.mrb[0].mxu0 %vm222_vm0, %v255_v30 }
 0x181   : > { %269 = vadd.xlane.f32.xlu1 %v268_v44  ;;  %1270 = vmatpush3.bf16.xpose.msk.msra.mxu0 %vm1903_vm1, %v1253_v38 }
 0x182   : > { %1250 = vmatprep.mubr.msk.f32.mxu0 %vm222_vm0, %v261_v36 }
 0x188   : > { %1251 = vmatmul.mubr.msk.f32.vlgmr.msra.gmra.mrb[2].mxu0 %vm222_vm0, %v262_v37 }
 0x201   : > { %v267_v50 = vpop.xlane.xlu0 %266 }
 0x202   : > { %v271_v53 = vmul.f32 0.5, %v267_v50 }
 0x204   : > { %v283_v55 = vmul.f32 %v1935_v52, %v271_v53 }
 0x206   : > { %v277_v56 = vpop.xlane.xlu1 %276  ;;  %v285_v6 = vsel %vm222_vm0, %v283_v55, 0.0 }
 0x207   : > { %v281_v57 = vmul.f32 0.5, %v277_v56 }
 0x209   : > { %v294_v60 = vmul.f32 %v1935_v52, %v281_v57 }
 0x20a   : > { %v280_v59 = vpop.xlane.xlu1 %279 }
 0x20b   : > { %v282_v61 = vmul.f32 0.5, %v280_v59  ;;  %v296_v0 = vsel %vm222_vm0, %v294_v60, 0.0 }
 0x20d   : > { %v295_v62 = vmul.f32 %v1939_v58, %v282_v61 }
 0x20e   : > { %v270_v63 = vpop.xlane.xlu1 %269 }
 0x20f   : > { %v297_v1 = vsel %vm222_vm0, %v295_v62, 0.0  ;;  %v272_v2 = vmul.f32 0.5, %v270_v63 }
 0x210   : > { %v298_v3 = vadd.f32 %v297_v1, %v296_v0 }
 0x211   : > { %v284_v4 = vmul.f32 %v1939_v58, %v272_v2 }
 0x212   : > { %v299_v5 = vrot.slane %v298_v3, 4 }
 0x213   : > { %v286_v7 = vsel %vm222_vm0, %v284_v4, 0.0 }
 0x214   : > { %v300_v8 = vadd.f32 %v299_v5, %v298_v3  ;;  %v287_v9 = vadd.f32 %v286_v7, %v285_v6 }
 0x216   : > { %v301_v10 = vrot.slane %v300_v8, 2  ;;  %v288_v11 = vrot.slane %v287_v9, 4 }
 0x218   : > { %v302_v12 = vadd.f32 %v301_v10, %v300_v8  ;;  %v289_v13 = vadd.f32 %v288_v11, %v287_v9 }
 0x21a   : > { %v303_v14 = vrot.slane %v302_v12, 1  ;;  %v290_v15 = vrot.slane %v289_v13, 2 }
 0x21c   : > { %v291_v16 = vadd.f32 %v290_v15, %v289_v13  ;;  %v304_v17 = vadd.f32 %v303_v14, %v302_v12 }
 0x21e   : > { %v292_v18 = vrot.slane %v291_v16, 1  ;;  %v476_v19 = vadd.f32 %v304_v17, %v282_v61  ;;  %v475_v20 = vadd.f32 %v304_v17, %v281_v57  ;;  %v306_v31 = vadd.f32 %v304_v17, %v272_v2 }
 0x21f   : > { %v305_v34 = vadd.f32 %v304_v17, %v271_v53 }
 0x220   : > { %v293_v21 = vadd.f32 %v292_v18, %v291_v16 }
 0x222   : > { %v397_v22 = vadd.f32 %v293_v21, %v272_v2  ;;  %v396_v23 = vadd.f32 %v293_v21, %v271_v53 }
 0x24e   : > { %v1245_v24 = vpop.f32.mrb[0].mxu1 }
 0x24f   : > { %v1948_v26 = vsub.f32 %v397_v22, %v1245_v24  ;;  %v464_v27 = vpop.f32.mrb[1].mxu1 }
 0x250   : > { %v1950_v28 = vsub.f32 %v396_v23, %v464_v27 }
 0x251   : > { %v618_v29 = vmul.f32 %v558_v25, %v1948_v26 }
 0x252   : > { %v617_v30 = vmul.f32 %v558_v25, %v1950_v28 }
 0x253   : > { %v620_v32 = vsub.f32 -2.7725887, %v618_v29  ;;  %v1238_v33 = vpop.f32.mrb[0].mxu0 }
 0x254   : > { %v619_v35 = vsub.f32 -2.7725887, %v617_v30  ;;  %v1954_v36 = vsub.f32 %v306_v31, %v1238_v33  ;;  %v385_v37 = vpop.f32.mrb[1].mxu0 }
 0x255   : > { %v622_v38 = vsel %vm222_vm0, %v620_v32, -inf  ;;  %v1957_v39 = vsub.f32 %v305_v34, %v385_v37 }
 0x256   : > { %v621_v40 = vsel %vm222_vm0, %v619_v35, -inf  ;;  %v560_v41 = vmul.f32 %v558_v25, %v1954_v36 }
 0x257   : > { %v623_v42 = vmax.f32 %v621_v40, %v622_v38  ;;  %v559_v43 = vmul.f32 %v558_v25, %v1957_v39 }
 0x258   : > { %v1962_v44 = vsub.f32 -2.7725887, %v560_v41 }
 0x259   : > { %v624_v45 = vrot.slane %v623_v42, 4  ;;  %v1964_v46 = vsub.f32 -2.7725887, %v559_v43 }
 0x25a   : > { %v566_v47 = vsel %vm222_vm0, %v1962_v44, -inf }
 0x25b   : > { %v625_v49 = vmax.f32 %v623_v42, %v624_v45  ;;  %567 = vmax.xlane.f32.xlu1 %v566_v47  ;;  %v1252_v50 = vpop.f32.mrb[2].mxu0  ;;  %v563_v51 = vsel %vm222_vm0, %v1964_v46, -inf }
 0x25c   : > { %v1970_v53 = vsub.f32 %v476_v19, %v1252_v50  ;;  %v543_v54 = vpop.f32.mrb[3].mxu0  ;;  %564 = vmax.xlane.f32.xlu0 %v563_v51  ;;  %v591_v55 = vmax.f32 %v563_v51, %v566_v47 }
 0x25d   : > { %v626_v56 = vrot.slane %v625_v49, 2  ;;  %v1972_v57 = vsub.f32 %v475_v20, %v543_v54 }
 0x25e   : > { %v650_v59 = vmul.f32 %v558_v25, %v1970_v53  ;;  %v592_v60 = vrot.slane %v591_v55, 4 }
 0x25f   : > { %v627_v61 = vmax.f32 %v625_v49, %v626_v56  ;;  %v649_v62 = vmul.f32 %v558_v25, %v1972_v57 }
 0x260   : > { %v652_v63 = vsub.f32 -2.7725887, %v650_v59  ;;  %v593_v0 = vmax.f32 %v591_v55, %v592_v60 }
 0x261   : > { %v628_v1 = vrot.slane %v627_v61, 1  ;;  %v651_v2 = vsub.f32 -2.7725887, %v649_v62 }
 0x262   : > { %v654_v3 = vsel %vm222_vm0, %v652_v63, -inf  ;;  %v594_v4 = vrot.slane %v593_v0, 2 }
 0x263   : > { %v1977_v5 = vmax.f32 %v627_v61, %v628_v1  ;;  %v653_v6 = vsel %vm222_vm0, %v651_v2, -inf }
 0x264   : > { %v655_v7 = vmax.f32 %v653_v6, %v654_v3  ;;  %v595_v8 = vmax.f32 %v593_v0, %v594_v4 }
 0x265   : > { %v630_v9 = vsub.f32 %v619_v35, %v1977_v5  ;;  %v631_v10 = vsub.f32 %v620_v32, %v1977_v5 }
 0x266   : > { %v656_v11 = vrot.slane %v655_v7, 4  ;;  %v596_v12 = vrot.slane %v595_v8, 1 }
 0x267   : > { %v632_v13 = vmul.f32 1.442695, %v630_v9  ;;  %v634_v14 = vmul.f32 1.442695, %v631_v10 }
 0x268   : > { %v657_v15 = vmax.f32 %v655_v7, %v656_v11  ;;  %v1982_v16 = vmax.f32 %v595_v8, %v596_v12  ;;  %v588_v12 = vstv %s587_s21 }
 0x269   : > { %1402 = vpow2.f32 %v632_v13 }
 0x26a   : > { %1404 = vpow2.f32 %v634_v14  ;;  %v658_v17 = vrot.slane %v657_v15, 2  ;;  %v598_v18 = vsub.f32 %v1964_v46, %v1982_v16  ;;  %v599_v19 = vsub.f32 %v1962_v44, %v1982_v16 }
 0x26c   : > { %v659_v20 = vmax.f32 %v657_v15, %v658_v17  ;;  %v600_v21 = vmul.f32 1.442695, %v598_v18  ;;  %v602_v22 = vmul.f32 1.442695, %v599_v19 }
 0x26e   : > { %v660_v23 = vrot.slane %v659_v20, 1  ;;  %1406 = vpow2.f32 %v600_v21 }
 0x26f   : > { %1408 = vpow2.f32 %v602_v22 }
 0x270   : > { %v661_v24 = vmax.f32 %v659_v20, %v660_v23 }
 0x272   : > { %v662_v25 = vsub.f32 %v651_v2, %v661_v24  ;;  %v663_v27 = vsub.f32 %v652_v63, %v661_v24 }
 0x273   : > { %v1403_v29 = vpop.eup %1402 }
 0x274   : > { %v1405_v30 = vpop.eup %1404  ;;  %v636_v31 = vsel %vm222_vm0, %v1403_v29, 0.0  ;;  %v664_v32 = vmul.f32 1.442695, %v662_v25  ;;  %v666_v33 = vmul.f32 1.442695, %v663_v27 }
 0x275   : > { %v637_v34 = vsel %vm222_vm0, %v1405_v30, 0.0 }
 0x276   : > { %v638_v35 = vadd.f32 %v637_v34, %v636_v31  ;;  %1410 = vpow2.f32 %v664_v32 }
 0x277   : > { %1412 = vpow2.f32 %v666_v33 }
 0x278   : > { %v1407_v37 = vpop.eup %1406  ;;  %v639_v38 = vrot.slane %v638_v35, 4 }
 0x279   : > { %v1409_v40 = vpop.eup %1408  ;;  %v604_v41 = vsel %vm222_vm0, %v1407_v37, 0.0 }
 0x27a   : > { %v640_v42 = vadd.f32 %v639_v38, %v638_v35  ;;  %v605_v43 = vsel %vm222_vm0, %v1409_v40, 0.0 }
 0x27b   : > { %v606_v45 = vadd.f32 %v605_v43, %v604_v41 }
 0x27c   : > { %v641_v47 = vrot.slane %v640_v42, 2 }
 0x27d   : > { %v607_v49 = vrot.slane %v606_v45, 4 }
 0x27e   : > { %v642_v50 = vadd.f32 %v641_v47, %v640_v42 }
 0x27f   : > { %v608_v51 = vadd.f32 %v607_v49, %v606_v45 }
 0x280   : > { %v1411_v54 = vpop.eup %1410  ;;  %v643_v55 = vrot.slane %v642_v50, 1 }
 0x281   : > { %v1413_v56 = vpop.eup %1412  ;;  %v668_v59 = vsel %vm222_vm0, %v1411_v54, 0.0  ;;  %v609_v60 = vrot.slane %v608_v51, 2 }
 0x282   : > { %v644_v61 = vadd.f32 %v643_v55, %v642_v50  ;;  %v669_v62 = vsel %vm222_vm0, %v1413_v56, 0.0 }
 0x283   : > { %v670_v63 = vadd.f32 %v669_v62, %v668_v59  ;;  %v610_v0 = vadd.f32 %v609_v60, %v608_v51 }
 0x284   : > { %1414 = vlog2.f32 %v644_v61 }
 0x285   : > { %v671_v1 = vrot.slane %v670_v63, 4  ;;  %v611_v2 = vrot.slane %v610_v0, 1 }
 0x287   : > { %v672_v3 = vadd.f32 %v671_v1, %v670_v63  ;;  %v612_v4 = vadd.f32 %v611_v2, %v610_v0 }
 0x289   : > { %v673_v6 = vrot.slane %v672_v3, 2  ;;  %1416 = vlog2.f32 %v612_v4 }
 0x28b   : > { %v674_v7 = vadd.f32 %v673_v6, %v672_v3 }
 0x28d   : > { %v675_v8 = vrot.slane %v674_v7, 1 }
 0x28e   : > { %v1415_v9 = vpop.eup %1414 }
 0x28f   : > { %v646_v10 = vmul.f32 0.6931472, %v1415_v9  ;;  %v676_v11 = vadd.f32 %v675_v8, %v674_v7 }
 0x291   : > { %v647_v13 = vadd.f32 %v646_v10, %v1977_v5  ;;  %1418 = vlog2.f32 %v676_v11 }
 0x293   : > { %v1417_v14 = vpop.eup %1416  ;;  %v648_v15 = vmul.f32 %v647_v13, %v588_v12  }
 0x294   : > { %v614_v17 = vmul.f32 0.6931472, %v1417_v14 }
 0x296   : > { %v615_v18 = vadd.f32 %v614_v17, %v1982_v16 }
 0x298   : > { %v616_v19 = vmul.f32 %v615_v18, %v588_v12  }
 0x29b   : > { %v1419_v20 = vpop.eup %1418 }
 0x29c   : > { %v678_v21 = vmul.f32 0.6931472, %v1419_v20 }
 0x29e   : > { %v679_v22 = vadd.f32 %v678_v21, %v661_v24 }
 0x2a0   : > { %v680_v23 = vmul.f32 %v679_v22, %v588_v12  }
 0x2e8   : > { %v568_v25 = vpop.xlane.xlu1 %567 }
 0x2e9   : > { %v570_v27 = vsub.f32 %v1962_v44, %v568_v25  ;;  %v565_v29 = vpop.xlane.xlu0 %564 }
 0x2ea   : > { %v569_v30 = vsub.f32 %v1964_v46, %v565_v29 }
 0x2eb   : > { %v573_v31 = vmul.f32 1.442695, %v570_v27 }
 0x2ec   : > { %v571_v32 = vmul.f32 1.442695, %v569_v30 }
 0x2ed   : > { %1420 = vpow2.f32 %v573_v31 }
 0x2ee   : > { %1422 = vpow2.f32 %v571_v32 }
 0x2f7   : > { %v1421_v5 = vpop.eup %1420 }
 0x2f8   : > { %v1423_v33 = vpop.eup %1422  ;;  %v578_v34 = vsel %vm222_vm0, %v1421_v5, 0.0 }
 0x2f9   : > { %579 = vadd.xlane.f32.xlu1 %v578_v34  ;;  %v575_v16 = vsel %vm222_vm0, %v1423_v33, 0.0 }
 0x2fa   : > { %576 = vadd.xlane.f32.xlu0 %v575_v16 }
 0x386   : > { %v580_v24 = vpop.xlane.xlu1 %579 }
 0x387   : > { %1424 = vlog2.f32 %v580_v24  ;;  %v577_v35 = vpop.xlane.xlu0 %576 }
 0x388   : > { %1426 = vlog2.f32 %v577_v35 }
 0x391   : > { %v1425_v44 = vpop.eup %1424 }
 0x392   : > { %v1427_v37 = vpop.eup %1426  ;;  %v584_v46 = vmul.f32 0.6931472, %v1425_v44 }
 0x393   : > { %v582_v38 = vmul.f32 0.6931472, %v1427_v37 }
 0x394   : > { %v586_v40 = vadd.f32 %v584_v46, %v568_v25 }
 0x395   : > { %v585_v41 = vadd.f32 %v582_v38, %v565_v29 }
 0x396   : > { %v590_v42 = vmul.f32 %v588_v12, %v586_v40  }
 0x397   : > { %v589_v43 = vmul.f32 %v588_v12, %v585_v41  }
 0x398 LB: >> { %v769_v45 = vmul.f32 %v1662_v15, %v1935_v52  ;;  %v770_v47 = vmul.f32 %v1662_v15, %v1939_v58  ;;  %s2040_s4 = sld [smem:[#allocation3 + %s1678_s17]]  ;;  %v812_v51 = vmul.f32 %v1658_v23, %v1939_v58  ;;  %v811_v13 = vmul.f32 %v1658_v23, %v1935_v52  ;;  %s686_s17 = sadd.s32 1, %s1678_s17   ;;  %s1678_s17 = sphi %s2015_s17, %s686_s17   ;;  %v1674_v43 = vphi %v589_v43, %v2277_v43   ;;  %v1670_v42 = vphi %v590_v42, %v2276_v42   ;;  %v1666_v19 = vphi %v616_v19, %v2275_v19   ;;  %v1662_v15 = vphi %v648_v15, %v2274_v15   ;;  %v1658_v23 = vphi %v680_v23, %v2273_v23  }
 0x399   : >> { %p683_p2 = scmp.ge.s32.totalorder %s686_s17, 40  }
 0x39a   : >> { %v771_v49 = vsel %vm222_vm0, %v769_v45, 0.0  ;;  %v774_v50 = vsel %vm222_vm0, %v770_v47, 0.0  ;;  %v816_v55 = vsel %vm222_vm0, %v812_v51, 0.0  ;;  %v813_v20 = vsel %vm222_vm0, %v811_v13, 0.0  ;;  %s2139_s14 = sld [smem:[#allocation3 + $0x27]] (%p683_p2)  ;;  %s1215_s21 = sshll.u32 (%p683_p2), %s1740_s0, 7 }
 0x39b   : >> { %772 = vadd.xlane.f32.xlu1 %v771_v49  ;;  %vm1000_vm4 = vcmask (%p683_p2), 7168   ;;  %vm1026_vm5 = vcmask (%p683_p2), 122880   ;;  %vm1053_vm6 = vcmp.eq.s32.totalorder (%p683_p2), %v1932_v48, 1  ;;  %vm1052_vm7 = vcmp.eq.s32.totalorder (%p683_p2), %v1932_v48, 0  ;;  %s1060_s0 = scalar_lea.sflag (%p683_p2), [#allocation6], %s1879_s15  ;;  %p2278_p1 = scmp.ne.s32.totalorder (%p683_p2), %s2264_s6, 0 }
 0x39c   : > { %s1686_s29 = smov (%p683_p2), [#allocation9]  }
 0x39e   : >> { %v693_v54 = vstv %s2040_s4  ;;  %s731_s8 = ssub.f32 0.0, %s2040_s4  ;;  %s1073_s4 = sshll.u32 (%p683_p2), %s2003_s28, 4  ;;  %s2213_s4 = int_to_ptr.vmem [resolvable:$true] %s1073_s4 }
 0x39f   : >> { %775 = vadd.xlane.f32.xlu1 %v774_v50  ;;  %1428 = vrcp.f32 %v693_v54 }
 0x3a0   : >> { %v2076_v47 = vstv %s731_s8  ;;  %s898_s18 = ssub.f32 (%p683_p2), 0.0, %s2139_s14 }
 0x3a3   : >> { %817 = vadd.xlane.f32.xlu1 %v816_v55 }
 0x3a9   : >> { %v1429_v56 = vpop.eup %1428 }
 0x3aa   : >> { %1281 = vpush %v1429_v56 }
 0x3db   : >> { %s1282_s16 = spop %1281 }
 0x3dc   : >> { %v2048_v59 = vstv %s1282_s16 }
 0x3dd   : >> { %v703_v60 = vmul.f32 %v1666_v19, %v2048_v59  ;;  %v735_v61 = vmul.f32 %v1674_v43, %v2048_v59  ;;  %v736_v62 = vmul.f32 %v1670_v42, %v2048_v59  ;;  %v697_v63 = vmul.f32 %v2048_v59, %v1957_v39 }
 0x3de   : >> { %v698_v2 = vmul.f32 %v2048_v59, %v1954_v36 }
 0x3df   : >> { %v704_v0 = vadd.f32 -2.7725887, %v703_v60  ;;  %v737_v1 = vadd.f32 -2.7725887, %v735_v61  ;;  %v738_v3 = vadd.f32 -2.7725887, %v736_v62  ;;  %v699_v62 = vmul.f32 %v2048_v59, %v1950_v28 }
 0x3e1   : >> { %v2060_v4 = vsub.f32 %v704_v0, %v697_v63  ;;  %v739_v6 = vsub.f32 %v737_v1, %v697_v63  ;;  %v740_v7 = vsub.f32 %v738_v3, %v698_v2  ;;  %v2065_v10 = vsub.f32 %v704_v0, %v698_v2 }
 0x3e2   : >> { %v700_v1 = vmul.f32 %v2048_v59, %v1948_v26 }
 0x3e3   : >> { %v707_v8 = vsel %vm222_vm0, %v2060_v4, -inf  ;;  %v741_v9 = vsel %vm222_vm0, %v739_v6, -inf  ;;  %v742_v11 = vsel %vm222_vm0, %v740_v7, -inf  ;;  %v710_v14 = vsel %vm222_vm0, %v2065_v10, -inf }
 0x3e4   : >> { %708 = vmax.xlane.f32.xlu0 %v707_v8  ;;  %v743_v12 = vmax.f32 %v741_v9, %v742_v11 }
 0x3e6   : >> { %v744_v17 = vrot.slane %v743_v12, 4 }
 0x3e8   : >> { %711 = vmax.xlane.f32.xlu0 %v710_v14  ;;  %v745_v18 = vmax.f32 %v743_v12, %v744_v17 }
 0x3ea   : >> { %v746_v21 = vrot.slane %v745_v18, 2 }
 0x3ec   : >> { %814 = vadd.xlane.f32.xlu0 %v813_v20  ;;  %v747_v22 = vmax.f32 %v745_v18, %v746_v21 }
 0x3ee   : >> { %v748_v25 = vrot.slane %v747_v22, 1 }
 0x3f0   : >> { %v749_v27 = vmax.f32 %v747_v22, %v748_v25 }
 0x3f2   : >> { %v750_v29 = vsub.f32 %v739_v6, %v749_v27  ;;  %v751_v30 = vsub.f32 %v740_v7, %v749_v27 }
 0x3f4   : >> { %v752_v31 = vmul.f32 1.442695, %v750_v29  ;;  %v754_v32 = vmul.f32 1.442695, %v751_v30 }
 0x3f6   : >> { %1430 = vpow2.f32 %v752_v31 }
 0x3f7   : >> { %1432 = vpow2.f32 %v754_v32 }
 0x400   : >> { %v1431_v5 = vpop.eup %1430 }
 0x401   : >> { %v1433_v33 = vpop.eup %1432  ;;  %v756_v34 = vsel %vm222_vm0, %v1431_v5, 0.0 }
 0x402   : >> { %v757_v16 = vsel %vm222_vm0, %v1433_v33, 0.0 }
 0x403   : >> { %v758_v24 = vadd.f32 %v757_v16, %v756_v34 }
 0x405   : >> { %v759_v35 = vrot.slane %v758_v24, 4 }
 0x407   : >> { %v760_v44 = vadd.f32 %v759_v35, %v758_v24 }
 0x409   : >> { %v761_v37 = vrot.slane %v760_v44, 2 }
 0x40b   : >> { %v762_v46 = vadd.f32 %v761_v37, %v760_v44 }
 0x40d   : >> { %v763_v38 = vrot.slane %v762_v46, 1 }
 0x40f   : >> { %v764_v40 = vadd.f32 %v763_v38, %v762_v46 }
 0x411   : >> { %1434 = vlog2.f32 %v764_v40 }
 0x41b   : >> { %v1435_v41 = vpop.eup %1434 }
 0x41c   : >> { %v766_v45 = vmul.f32 0.6931472, %v1435_v41 }
 0x41e   : >> { %v767_v49 = vadd.f32 %v766_v45, %v749_v27 }
 0x420   : >> { %v768_v50 = vmul.f32 %v767_v49, %v2076_v47 }
 0x422   : >> { %v857_v51 = vadd.f32 %v1666_v19, %v768_v50 }
 0x424   : >> { %v2080_v19 = vmul.f32 0.5, %v857_v51  }
 0x426   : >> { %v2271_v54 = vmov %v2080_v19 }
 0x428   : >> { %v773_v55 = vpop.xlane.xlu1 %772 }
 0x429   : >> { %v777_v56 = vmul.f32 %v773_v55, %v2048_v59 }
 0x42b   : >> { %v779_v60 = vadd.f32 -2.7725887, %v777_v56 }
 0x42c   : >> { %v776_v61 = vpop.xlane.xlu1 %775 }
 0x42d   : >> { %v778_v63 = vmul.f32 %v776_v61, %v2048_v59  ;;  %v781_v0 = vsub.f32 %v779_v60, %v699_v62  ;;  %v702_v62 = vmul.f32 %v2048_v59, %v1970_v53 }
 0x42f   : >> { %v780_v2 = vadd.f32 -2.7725887, %v778_v63  ;;  %v783_v6 = vsel %vm222_vm0, %v781_v0, -inf }
 0x430   : >> { %v818_v46 = vpop.xlane.xlu1 %817 }
 0x431   : >> { %v782_v3 = vsub.f32 %v780_v2, %v700_v1  ;;  %v820_v45 = vmul.f32 %v818_v46, %v2048_v59 }
 0x433   : >> { %v784_v19 = vsel %vm222_vm0, %v782_v3, -inf  ;;  %v822_v56 = vadd.f32 -2.7725887, %v820_v45 }
 0x434   : >> { %v785_v7 = vmax.f32 %v783_v6, %v784_v19 }
 0x435   : >> { %v824_v63 = vsub.f32 %v822_v56, %v702_v62 }
 0x436   : >> { %v786_v8 = vrot.slane %v785_v7, 4 }
 0x438   : >> { %v787_v9 = vmax.f32 %v785_v7, %v786_v8 }
 0x43a   : >> { %v788_v11 = vrot.slane %v787_v9, 2 }
 0x43c   : >> { %v789_v12 = vmax.f32 %v787_v9, %v788_v11 }
 0x43e   : >> { %v790_v13 = vrot.slane %v789_v12, 1 }
 0x440   : >> { %v791_v14 = vmax.f32 %v789_v12, %v790_v13 }
 0x442   : >> { %v792_v17 = vsub.f32 %v781_v0, %v791_v14  ;;  %v793_v18 = vsub.f32 %v782_v3, %v791_v14  ;;  %v701_v0 = vmul.f32 %v2048_v59, %v1972_v57  ;;  %v826_v3 = vsel %vm222_vm0, %v824_v63, -inf }
 0x444   : >> { %v794_v20 = vmul.f32 1.442695, %v792_v17  ;;  %v796_v21 = vmul.f32 1.442695, %v793_v18 }
 0x446   : >> { %1436 = vpow2.f32 %v794_v20 }
 0x447   : >> { %1438 = vpow2.f32 %v796_v21 }
 0x450   : >> { %v1437_v22 = vpop.eup %1436 }
 0x451   : >> { %v1439_v25 = vpop.eup %1438  ;;  %v798_v27 = vsel %vm222_vm0, %v1437_v22, 0.0 }
 0x452   : >> { %v799_v29 = vsel %vm222_vm0, %v1439_v25, 0.0 }
 0x453   : >> { %v800_v30 = vadd.f32 %v799_v29, %v798_v27 }
 0x455   : >> { %v801_v31 = vrot.slane %v800_v30, 4 }
 0x457   : >> { %v802_v32 = vadd.f32 %v801_v31, %v800_v30 }
 0x459   : >> { %v803_v5 = vrot.slane %v802_v32, 2 }
 0x45b   : >> { %v804_v33 = vadd.f32 %v803_v5, %v802_v32 }
 0x45d   : >> { %v805_v34 = vrot.slane %v804_v33, 1 }
 0x45f   : >> { %v806_v16 = vadd.f32 %v805_v34, %v804_v33 }
 0x461   : >> { %1440 = vlog2.f32 %v806_v16 }
 0x46b   : >> { %v1441_v24 = vpop.eup %1440 }
 0x46c   : >> { %v808_v35 = vmul.f32 0.6931472, %v1441_v24 }
 0x46e   : >> { %v809_v44 = vadd.f32 %v808_v35, %v791_v14 }
 0x470   : >> { %v810_v37 = vmul.f32 %v809_v44, %v2076_v47 }
 0x471   : >> { %v2093_v38 = vpop.xlane.xlu0 %708 }
 0x472   : >> { %v713_v40 = vsub.f32 %v2060_v4, %v2093_v38  ;;  %v859_v41 = vadd.f32 %v1662_v15, %v810_v37 }
 0x474   : >> { %v715_v49 = vmul.f32 1.442695, %v713_v40  ;;  %v2099_v15 = vmul.f32 0.5, %v859_v41  }
 0x475   : >> { %v2101_v51 = vpop.xlane.xlu0 %711 }
 0x476   : >> { %v2272_v50 = vmov %v2099_v15  ;;  %1442 = vpow2.f32 %v715_v49  ;;  %v714_v55 = vsub.f32 %v2065_v10, %v2101_v51 }
 0x478   : >> { %v717_v60 = vmul.f32 1.442695, %v714_v55 }
 0x479   : >> { %v815_v61 = vpop.xlane.xlu0 %814 }
 0x47a   : >> { %1444 = vpow2.f32 %v717_v60  ;;  %v819_v4 = vmul.f32 %v815_v61, %v2048_v59 }
 0x47c   : >> { %v821_v15 = vadd.f32 -2.7725887, %v819_v4 }
 0x47e   : >> { %v823_v1 = vsub.f32 %v821_v15, %v701_v0 }
 0x480   : >> { %v1443_v2 = vpop.eup %1442  ;;  %v825_v10 = vsel %vm222_vm0, %v823_v1, -inf }
 0x481   : >> { %v827_v6 = vmax.f32 %v825_v10, %v826_v3  ;;  %v719_v19 = vsel %vm222_vm0, %v1443_v2, 0.0 }
 0x482   : >> { %720 = vadd.xlane.f32.xlu0 %v719_v19  ;;  %v2275_v19 = vmov %v2271_v54 }
 0x483   : >> { %v828_v7 = vrot.slane %v827_v6, 4 }
 0x484   : >> { %v1445_v8 = vpop.eup %1444 }
 0x485   : >> { %v829_v9 = vmax.f32 %v827_v6, %v828_v7  ;;  %v722_v11 = vsel %vm222_vm0, %v1445_v8, 0.0 }
 0x486   : >> { %723 = vadd.xlane.f32.xlu1 %v722_v11 }
 0x487   : >> { %v830_v12 = vrot.slane %v829_v9, 2 }
 0x489   : >> { %v831_v13 = vmax.f32 %v829_v9, %v830_v12 }
 0x48b   : >> { %v832_v59 = vrot.slane %v831_v13, 1 }
 0x48d   : >> { %v833_v14 = vmax.f32 %v831_v13, %v832_v59 }
 0x48f   : >> { %v834_v17 = vsub.f32 %v823_v1, %v833_v14  ;;  %v835_v18 = vsub.f32 %v824_v63, %v833_v14 }
 0x491   : >> { %v836_v20 = vmul.f32 1.442695, %v834_v17  ;;  %v838_v21 = vmul.f32 1.442695, %v835_v18 }
 0x493   : >> { %1446 = vpow2.f32 %v836_v20 }
 0x494   : >> { %1448 = vpow2.f32 %v838_v21 }
 0x49d   : >> { %v1447_v22 = vpop.eup %1446 }
 0x49e   : >> { %v1449_v25 = vpop.eup %1448  ;;  %v840_v27 = vsel %vm222_vm0, %v1447_v22, 0.0 }
 0x49f   : >> { %v841_v29 = vsel %vm222_vm0, %v1449_v25, 0.0 }
 0x4a0   : >> { %v842_v30 = vadd.f32 %v841_v29, %v840_v27 }
 0x4a2   : >> { %v843_v31 = vrot.slane %v842_v30, 4 }
 0x4a4   : >> { %v844_v32 = vadd.f32 %v843_v31, %v842_v30 }
 0x4a6   : >> { %v845_v5 = vrot.slane %v844_v32, 2 }
 0x4a8   : >> { %v846_v33 = vadd.f32 %v845_v5, %v844_v32 }
 0x4aa   : >> { %v847_v34 = vrot.slane %v846_v33, 1 }
 0x4ac   : >> { %v848_v16 = vadd.f32 %v847_v34, %v846_v33 }
 0x4ae   : >> { %1450 = vlog2.f32 %v848_v16 }
 0x4b8   : >> { %v1451_v24 = vpop.eup %1450 }
 0x4b9   : >> { %v850_v35 = vmul.f32 0.6931472, %v1451_v24 }
 0x4bb   : >> { %v851_v44 = vadd.f32 %v850_v35, %v833_v14 }
 0x4bd   : >> { %v852_v37 = vmul.f32 %v851_v44, %v2076_v47 }
 0x4bf   : >> { %v861_v46 = vadd.f32 %v1658_v23, %v852_v37 }
 0x4c1   : >> { %v862_v40 = vmul.f32 0.5, %v861_v46  }
 0x50f   : >> { %v721_v41 = vpop.xlane.xlu0 %720 }
 0x510   : >> { %1452 = vlog2.f32 %v721_v41 }
 0x513   : >> { %v724_v45 = vpop.xlane.xlu1 %723 }
 0x514   : >> { %1454 = vlog2.f32 %v724_v45 }
 0x51a   : >> { %v1453_v49 = vpop.eup %1452 }
 0x51b   : >> { %v726_v55 = vmul.f32 0.6931472, %v1453_v49 }
 0x51d   : >> { %v729_v56 = vadd.f32 %v726_v55, %v2093_v38 }
 0x51e   : >> { %v1455_v60 = vpop.eup %1454 }
 0x51f   : >> { %v733_v61 = vmul.f32 %v2076_v47, %v729_v56  ;;  %v728_v62 = vmul.f32 0.6931472, %v1455_v60 }
 0x521   : >> { %v853_v4 = vadd.f32 %v1674_v43, %v733_v61  ;;  %v730_v63 = vadd.f32 %v728_v62, %v2101_v51 }
 0x523   : >> { %v855_v0 = vmul.f32 0.5, %v853_v4   ;;  %v734_v23 = vmul.f32 %v2076_v47, %v730_v63  ;;  %685 = sbr.rel (!%p683_p2) target bundleno = 920 (0x398), region = 93 }
 0x525   : >> { %v854_v15 = vadd.f32 %v1670_v42, %v734_v23  ;;  %v2273_v23 = vmov %v862_v40  ;;  %v2277_v43 = vmov %v855_v0 }
 0x526   : > { %v864_v43 = vstv (%p683_p2), %s2139_s14  ;;  %s2211_s14 = scalar_lea.hbm (%p683_p2), %s2259_s3, %s1215_s21 }
 0x527   : >> { %v856_v1 = vmul.f32 0.5, %v854_v15   ;;  %v2274_v15 = vmov %v2272_v50  ;;  %1456 = vrcp.f32 (%p683_p2), %v864_v43 }
 0x529   : >> { %v2276_v42 = vmov %v856_v1 }
 0x531   : > { %v1457_v47 = vpop.eup %1456 }
 0x532   : > { %1283 = vpush %v1457_v47 }
 0x563   : > { %s1284_s5 = spop %1283 }
 0x564   : > { %v867_v38 = vstv %s1284_s5  ;;  %s1558_s5 = scalar_lea.vmem %s2213_s4, 128 }
 0x565   : > { %v938_v51 = vmul.f32 %v867_v38, %v2272_v50  ;;  %v870_v2 = vmul.f32 %v867_v38, %v2271_v54  ;;  %v936_v3 = vmul.f32 %v867_v38, %v1950_v28  ;;  %v902_v10 = vmul.f32 %v867_v38, %v855_v0  ;;  %p1559_p4 = scmp.ne.s32.totalorder %s2213_s4, %s1558_s5 }
 0x566   : > { %v903_v6 = vmul.f32 %v867_v38, %v856_v1  ;;  %v868_v8 = vmul.f32 %v867_v38, %v1957_v39  ;;  %v970_v58 = vmul.f32 %v867_v38, %v862_v40  ;;  %v937_v19 = vmul.f32 %v867_v38, %v1948_v26 }
 0x567   : > { %v939_v7 = vadd.f32 -2.7725887, %v938_v51  ;;  %v871_v52 = vadd.f32 -2.7725887, %v870_v2  ;;  %v904_v42 = vadd.f32 -2.7725887, %v902_v10  ;;  %v869_v9 = vmul.f32 %v867_v38, %v1954_v36  ;;  %p1560_p13 = pnand %p1559_p4, %p2278_p1 }
 0x568   : > { %v905_v11 = vadd.f32 -2.7725887, %v903_v6  ;;  %v971_v39 = vadd.f32 -2.7725887, %v970_v58  ;;  %v969_v20 = vmul.f32 %v867_v38, %v1970_v53  ;;  %v968_v21 = vmul.f32 %v867_v38, %v1972_v57 }
 0x569   : > { %v940_v12 = vsub.f32 %v939_v7, %v936_v3  ;;  %v872_v13 = vsub.f32 %v871_v52, %v868_v8  ;;  %v906_v50 = vsub.f32 %v904_v42, %v868_v8  ;;  %v2148_v59 = vsub.f32 %v939_v7, %v937_v19  ;;  %p1561_p8 = pneg %p1560_p13 }
 0x56a   : > { %v907_v54 = vsub.f32 %v905_v11, %v869_v9  ;;  %v873_v17 = vsub.f32 %v871_v52, %v869_v9  ;;  %v973_v29 = vsub.f32 %v971_v39, %v969_v20  ;;  %v972_v30 = vsub.f32 %v971_v39, %v968_v21 }
 0x56b   : > { %v942_v28 = vsel %vm222_vm0, %v940_v12, -inf  ;;  %v874_v14 = vsel %vm222_vm0, %v872_v13, -inf  ;;  %v908_v18 = vsel %vm222_vm0, %v906_v50, -inf  ;;  %v945_v22 = vsel %vm222_vm0, %v2148_v59, -inf }
 0x56c   : > { %943 = vmax.xlane.f32.xlu1 %v942_v28  ;;  %875 = vmax.xlane.f32.xlu0 %v874_v14  ;;  %v909_v26 = vsel %vm222_vm0, %v907_v54, -inf  ;;  %v877_v25 = vsel %vm222_vm0, %v873_v17, -inf  ;;  %v977_v5 = vsel %vm222_vm0, %v973_v29, -inf  ;;  %v974_v33 = vsel %vm222_vm0, %v972_v30, -inf }
 0x56d   : > { %v910_v36 = vmax.f32 %v908_v18, %v909_v26  ;;  %v2164_v0 = vstv %s898_s18 }
 0x56f   : > { %v911_v27 = vrot.slane %v910_v36, 4 }
 0x570   : > { %946 = vmax.xlane.f32.xlu1 %v945_v22  ;;  %878 = vmax.xlane.f32.xlu0 %v877_v25 }
 0x571   : > { %v912_v31 = vmax.f32 %v910_v36, %v911_v27 }
 0x573   : > { %v913_v32 = vrot.slane %v912_v31, 2 }
 0x574   : > { %978 = vmax.xlane.f32.xlu1 %v977_v5  ;;  %975 = vmax.xlane.f32.xlu0 %v974_v33 }
 0x575   : > { %v914_v53 = vmax.f32 %v912_v31, %v913_v32 }
 0x577   : > { %v915_v57 = vrot.slane %v914_v53, 1 }
 0x579   : > { %v916_v34 = vmax.f32 %v914_v53, %v915_v57 }
 0x57b   : > { %v917_v16 = vsub.f32 %v906_v50, %v916_v34  ;;  %v918_v24 = vsub.f32 %v907_v54, %v916_v34 }
 0x57d   : > { %v921_v35 = vmul.f32 1.442695, %v918_v24  ;;  %v919_v44 = vmul.f32 1.442695, %v917_v16 }
 0x57f   : > { %1458 = vpow2.f32 %v921_v35 }
 0x580   : > { %1460 = vpow2.f32 %v919_v44 }
 0x589   : > { %v1459_v37 = vpop.eup %1458 }
 0x58a   : > { %v1461_v46 = vpop.eup %1460  ;;  %v924_v40 = vsel %vm222_vm0, %v1459_v37, 0.0 }
 0x58b   : > { %v923_v41 = vsel %vm222_vm0, %v1461_v46, 0.0 }
 0x58c   : > { %v925_v45 = vadd.f32 %v924_v40, %v923_v41 }
 0x58e   : > { %v926_v49 = vrot.slane %v925_v45, 4 }
 0x590   : > { %v927_v55 = vadd.f32 %v926_v49, %v925_v45 }
 0x592   : > { %v928_v56 = vrot.slane %v927_v55, 2 }
 0x594   : > { %v929_v60 = vadd.f32 %v928_v56, %v927_v55 }
 0x596   : > { %v930_v61 = vrot.slane %v929_v60, 1 }
 0x598   : > { %v931_v62 = vadd.f32 %v930_v61, %v929_v60 }
 0x59a   : > { %1462 = vlog2.f32 %v931_v62 }
 0x5a4   : > { %v1463_v4 = vpop.eup %1462 }
 0x5a5   : > { %v933_v63 = vmul.f32 0.6931472, %v1463_v4 }
 0x5a7   : > { %v934_v23 = vadd.f32 %v933_v63, %v916_v34 }
 0x5a9   : > { %v2167_v15 = vmul.f32 %v934_v23, %v2164_v0 }
 0x5f9   : > { %v2169_v1 = vpop.xlane.xlu1 %943  ;;  %v876_v43 = vpop.xlane.xlu0 %875 }
 0x5fa   : > { %v948_v47 = vsub.f32 %v940_v12, %v2169_v1  ;;  %v880_v38 = vsub.f32 %v872_v13, %v876_v43 }
 0x5fc   : > { %v882_v51 = vmul.f32 1.442695, %v880_v38  ;;  %v950_v2 = vmul.f32 1.442695, %v948_v47 }
 0x5fd   : > { %v2172_v3 = vpop.xlane.xlu1 %946  ;;  %v879_v10 = vpop.xlane.xlu0 %878 }
 0x5fe   : > { %v949_v6 = vsub.f32 %v2148_v59, %v2172_v3  ;;  %v881_v7 = vsub.f32 %v873_v17, %v879_v10  ;;  %1464 = vpow2.f32 %v882_v51  ;;  %v1027_v51 = vsel %vm1026_vm5, %v2167_v15, 0.0 }
 0x5ff   : > { %1466 = vpow2.f32 %v950_v2 }
 0x600   : > { %v884_v8 = vmul.f32 1.442695, %v881_v7  ;;  %v952_v52 = vmul.f32 1.442695, %v949_v6 }
 0x601   : > { %v2176_v58 = vpop.xlane.xlu1 %978  ;;  %v976_v42 = vpop.xlane.xlu0 %975 }
 0x602   : > { %v981_v19 = vsub.f32 %v973_v29, %v2176_v58  ;;  %v980_v9 = vsub.f32 %v972_v30, %v976_v42  ;;  %1468 = vpow2.f32 %v884_v8 }
 0x603   : > { %1470 = vpow2.f32 %v952_v52 }
 0x604   : > { %v982_v11 = vmul.f32 1.442695, %v980_v9  ;;  %v984_v12 = vmul.f32 1.442695, %v981_v19 }
 0x606   : > { %1472 = vpow2.f32 %v982_v11 }
 0x607   : > { %1474 = vpow2.f32 %v984_v12 }
 0x608   : > { %v1465_v13 = vpop.eup %1464 }
 0x609   : > { %v886_v50 = vsel %vm222_vm0, %v1465_v13, 0.0  ;;  %v1467_v59 = vpop.eup %1466 }
 0x60a   : > { %887 = vadd.xlane.f32.xlu0 %v886_v50  ;;  %v954_v28 = vsel %vm222_vm0, %v1467_v59, 0.0 }
 0x60c   : > { %v1469_v54 = vpop.eup %1468 }
 0x60d   : > { %v889_v14 = vsel %vm222_vm0, %v1469_v54, 0.0  ;;  %v1471_v17 = vpop.eup %1470 }
 0x60e   : > { %955 = vadd.xlane.f32.xlu0 %v954_v28  ;;  %890 = vadd.xlane.f32.xlu1 %v889_v14  ;;  %v957_v18 = vsel %vm222_vm0, %v1471_v17, 0.0 }
 0x610   : > { %v1473_v39 = vpop.eup %1472 }
 0x611   : > { %v986_v26 = vsel %vm222_vm0, %v1473_v39, 0.0  ;;  %v1475_v36 = vpop.eup %1474 }
 0x612   : > { %958 = vadd.xlane.f32.xlu1 %v957_v18  ;;  %987 = vadd.xlane.f32.xlu0 %v986_v26  ;;  %v989_v20 = vsel %vm222_vm0, %v1475_v36, 0.0 }
 0x616   : > { %990 = vadd.xlane.f32.xlu1 %v989_v20 }
 0x697   : > { %v888_v21 = vpop.xlane.xlu0 %887 }
 0x698   : > { %1476 = vlog2.f32 %v888_v21 }
 0x69b   : > { %v891_v22 = vpop.xlane.xlu1 %890  ;;  %v956_v25 = vpop.xlane.xlu0 %955 }
 0x69c   : > { %1478 = vlog2.f32 %v891_v22 }
 0x69d   : > { %1480 = vlog2.f32 %v956_v25 }
 0x69f   : > { %v959_v27 = vpop.xlane.xlu1 %958  ;;  %v988_v29 = vpop.xlane.xlu0 %987 }
 0x6a0   : > { %1482 = vlog2.f32 %v959_v27 }
 0x6a1   : > { %1484 = vlog2.f32 %v988_v29 }
 0x6a2   : > { %v1477_v30 = vpop.eup %1476 }
 0x6a3   : > { %v893_v31 = vmul.f32 0.6931472, %v1477_v30  ;;  %v991_v32 = vpop.xlane.xlu1 %990  ;;  %v1056_v30 = vstv %s248_s9  ;;  %s1562_s9 = sshll.u32 %s1686_s29, 4  ;;  %s1563_s9 = int_to_ptr.vmem [resolvable:$false] %s1562_s9 }
 0x6a4   : > { %1486 = vlog2.f32 %v991_v32  ;;  %s1564_s18 = scalar_lea.vmem %s1563_s9, 256  ;;  %p1565_p10 = scmp.lt.s32.totalorder %s2213_s4, %s1563_s9 }
 0x6a5   : > { %v896_v5 = vadd.f32 %v893_v31, %v876_v43  ;;  %p1566_p12 = scmp.lt.s32.totalorder %s1564_s18, %s1558_s5 }
 0x6a6   : > { %v1479_v33 = vpop.eup %1478 }
 0x6a7   : > { %v1481_v53 = vpop.eup %1480  ;;  %v895_v57 = vmul.f32 0.6931472, %v1479_v33  ;;  %v900_v24 = vmul.f32 %v2164_v0, %v896_v5  ;;  %p1567_p0 = por %p1566_p12, %p1565_p10 }
 0x6a8   : > { %v961_v34 = vmul.f32 0.6931472, %v1481_v53 }
 0x6a9   : > { %v897_v16 = vadd.f32 %v895_v57, %v879_v10  ;;  %v1001_v49 = vsel %vm1000_vm4, %v900_v24, 0.0  ;;  %p1568_p6 = pnand %p1567_p0, %p1561_p8 }
 0x6aa   : > { %v1483_v35 = vpop.eup %1482  ;;  %v964_v44 = vadd.f32 %v961_v34, %v2169_v1 }
 0x6ab   : > { %v1485_v37 = vpop.eup %1484  ;;  %v963_v46 = vmul.f32 0.6931472, %v1483_v35  ;;  %v901_v40 = vmul.f32 %v2164_v0, %v897_v16 }
 0x6ac   : > { %v993_v41 = vmul.f32 0.6931472, %v1485_v37  ;;  %v966_v56 = vmul.f32 %v964_v44, %v2164_v0 }
 0x6ad   : > { %v965_v45 = vadd.f32 %v963_v46, %v2172_v3  ;;  %v1002_v55 = vsel %vm1000_vm4, %v901_v40, 0.0 }
 0x6ae   : > { %v1487_v60 = vpop.eup %1486  ;;  %v996_v61 = vadd.f32 %v993_v41, %v976_v42  ;;  %v1003_v62 = vadd.f32 %v1002_v55, %v1001_v49  ;;  %v1013_v1 = vsel %vm1000_vm4, %v966_v56, 0.0 }
 0x6af   : > { %v995_v4 = vmul.f32 0.6931472, %v1487_v60  ;;  %v967_v63 = vmul.f32 %v965_v45, %v2164_v0 }
 0x6b0   : > { %1004 = vadd.xlane.f32.xlu0 %v1003_v62  ;;  %v998_v47 = vmul.f32 %v996_v61, %v2164_v0 }
 0x6b1   : > { %v997_v23 = vadd.f32 %v995_v4, %v2176_v58  ;;  %v1014_v43 = vsel %vm1000_vm4, %v967_v63, 0.0 }
 0x6b2   : > { %v1015_v38 = vadd.f32 %v1014_v43, %v1013_v1  ;;  %v1038_v3 = vsel %vm1000_vm4, %v998_v47, 0.0 }
 0x6b3   : > { %v999_v2 = vmul.f32 %v997_v23, %v2164_v0 }
 0x6b4   : > { %1028 = vadd.xlane.f32.xlu0 %v1027_v51  ;;  %1016 = vadd.xlane.f32.xlu1 %v1015_v38 }
 0x6b5   : > { %v1039_v10 = vsel %vm1000_vm4, %v999_v2, 0.0 }
 0x6b6   : > { %v1040_v6 = vadd.f32 %v1039_v10, %v1038_v3 }
 0x6b8   : > { %1041 = vadd.xlane.f32.xlu1 %v1040_v6 }
 0x73d   : > { %v1005_v7 = vpop.xlane.xlu0 %1004 }
 0x73e   : > { %v1006_v8 = vrot.slane %v1005_v7, 4 }
 0x740   : > { %v1007_v52 = vadd.f32 %v1006_v8, %v1005_v7 }
 0x741   : > { %v1017_v58 = vpop.xlane.xlu1 %1016  ;;  %v1029_v42 = vpop.xlane.xlu0 %1028 }
 0x742   : > { %v1008_v19 = vrot.slane %v1007_v52, 2  ;;  %v1018_v9 = vrot.slane %v1017_v58, 4  ;;  %v1030_v11 = vrot.slane %v1029_v42, 4 }
 0x744   : > { %v1019_v12 = vadd.f32 %v1018_v9, %v1017_v58  ;;  %v1031_v15 = vadd.f32 %v1030_v11, %v1029_v42  ;;  %v1009_v13 = vadd.f32 %v1008_v19, %v1007_v52 }
 0x745   : > { %v1042_v0 = vpop.xlane.xlu1 %1041 }
 0x746   : > { %v1020_v50 = vrot.slane %v1019_v12, 2  ;;  %v1032_v59 = vrot.slane %v1031_v15, 2  ;;  %v1043_v54 = vrot.slane %v1042_v0, 4  ;;  %v1010_v28 = vrot.slane %v1009_v13, 1 }
 0x748   : > { %v1033_v14 = vadd.f32 %v1032_v59, %v1031_v15  ;;  %v1044_v17 = vadd.f32 %v1043_v54, %v1042_v0  ;;  %v1011_v39 = vadd.f32 %v1010_v28, %v1009_v13  ;;  %v1021_v18 = vadd.f32 %v1020_v50, %v1019_v12 }
 0x74a   : > { %v1045_v26 = vrot.slane %v1044_v17, 2  ;;  %1285 = vpush %v1011_v39  ;;  %v1022_v36 = vrot.slane %v1021_v18, 1  ;;  %v1034_v20 = vrot.slane %v1033_v14, 1 }
 0x74c   : > { %v1046_v21 = vadd.f32 %v1045_v26, %v1044_v17  ;;  %v1023_v22 = vadd.f32 %v1022_v36, %v1021_v18  ;;  %v1035_v25 = vadd.f32 %v1034_v20, %v1033_v14 }
 0x74e   : > { %1287 = vpush %v1023_v22  ;;  %v1047_v27 = vrot.slane %v1046_v21, 1 }
 0x74f   : > { %1289 = vpush %v1035_v25 }
 0x750   : > { %v1048_v29 = vadd.f32 %v1047_v27, %v1046_v21 }
 0x752   : > { %1291 = vpush %v1048_v29 }
 0x77b   : > { %s1286_s19 = spop %1285 }
 0x77f   : > { %s1288_s26 = spop %1287 }
 0x780   : > { %s1025_s13 = ssub.f32 %s1286_s19, %s1288_s26  ;;  %s1290_s11 = spop %1289 }
 0x782   : > { %s1037_s12 = sadd.f32 %s1290_s11, %s1025_s13 }
 0x783   : > { %s1292_s10 = spop %1291 }
 0x784   : > { %s1050_s20 = ssub.f32 %s1037_s12, %s1292_s10 }
 0x786   : > { %s1051_s17 = smul.f32 0.0625, %s1050_s20 }
 0x788   : > { %v1054_v31 = vstv %s1051_s17 }
 0x789   : > { %v1055_v32 = vsel %vm1053_vm6, %v1054_v31, 0.0 }
 0x78a   : > { %v1057_v5 = vsel %vm1052_vm7, %v1056_v30, %v1055_v32 }
 0x78b   : > { %1058 = vst [vmem:[%s2003_s28] sm:$0xff] %v1057_v5 }
 0x78c   : > { %1571 = shalt.err (!%p1568_p6)
}
 0x78d   : > { %s1572_s15 = scalar_lea.hbm %s2211_s14, 128  ;;  %s1576_s26 = scalar_lea.hbm %s2259_s3, 256 }
 0x78e   : > { %p1573_p11 = scmp.ne.s32.totalorder %s2211_s14, %s1572_s15  ;;  %p1577_p7 = scmp.lt.u32.totalorder %s2211_s14, %s2259_s3 }
 0x78f   : > { %p1578_p9 = scmp.lt.u32.totalorder %s1576_s26, %s1572_s15  ;;  %p1580_p4 = scmp.lt.u32.totalorder %s1572_s15, %s2211_s14 }
 0x790   : > { %p1574_p3 = pnand %p1573_p11, %p2278_p1 }
 0x791   : > { %p1579_p2 = por %p1578_p9, %p1577_p7 }
 0x792   : > { %p1575_p5 = pneg %p1574_p3 }
 0x793   : > { %p1581_p13 = por %p1580_p4, %p1579_p2 }
 0x795   : > { %p1582_p8 = pnand %p1581_p13, %p1575_p5 }
 0x797   : > { %1585 = shalt.err (!%p1582_p8)
}
 0x798   : > { %1297 = dma.vmem_to_hbm [thread:$0]  (%p2278_p1), %s2213_s4, 128, %s2211_s14, %s1060_s0  }
 0x799 PF: > { %s1085_s12 = sand.u32 1, %s1642_s22   ;;  %p2279_p10 = scmp.ne.s32.totalorder %s2265_s7, 0 }
 0x79a   : > { %p2280_p12 = scmp.ge.s32.totalorder %s1654_s25, 2  ;;  %s1086_s10 = scalar_lea.sflag [#allocation6], %s1085_s12 }
 0x79c   : > { %p1307_p0 = pnand %p2280_p12, %p2279_p10 }
 0x79e   : > { %1637 = dma.done.wait (!%p1307_p0), %s1086_s10, 128  }
 0x79f   : > { %1639 = vsyncadd (!%p1307_p0), %s1086_s10, 4294967168  ;;  %p23_p6 = scmp.ge.s32.totalorder %s1744_s27, 4   ;;  %s2281_s22 = smov %s1646_s23 }
 0x7a0   : > { %s2282_s23 = smov %s1650_s24  ;;  %s2283_s24 = smov %s1756_s30 }
 0x7a1   : > { %s2284_s25 = smov %s1744_s27  ;;  %25 = sbr.rel (!%p23_p6) target bundleno = 19 (0x13), region = 104 }
 0x7a8   :  { %1091 = vsyncpa [#allocation5], 1 }
 0x7a9   :  { %1093 = vsyncpa [#allocation5 + $0x1], 1 }
 0x7aa   :  { %1094 = vsyncpa [#allocation8], 1 }
 0x7ab   :  { %1096 = vsyncpa [#allocation8 + $0x1], 1 }
 0x7ac   :  { %1097 = vsyncpa [#allocation6], 1 }
 0x7ad   :  { %1099 = vsyncpa [#allocation6 + $0x1], 1 }

</bundles_post_ra>
